<compile_context>
chip_gen: v6e
topology: v6e:2x2x1
jax: 0.10.0
libtpu: 0.0.40
codegen_flags: <defaults>
</compile_context>

<pallas_src>
import jax
import jax.numpy as jnp
import numpy as np
from jax.experimental import pallas as pl
from jax.experimental.pallas import tpu as pltpu

EPS = 1e-5          # nn.BatchNorm2d default eps
NEG_SLOPE = 0.2     # nn.LeakyReLU(0.2)
KH = KW = 4         # conv kernel size
STRIDE = 2          # conv stride
TAP_BLOCK = 64      # rows reserved per block-2 tap (bf16 (16,128)-tile aligned)


def _conv_out(n):
    return (n - KH) // STRIDE + 1


# -------------------- fused Pallas kernel (hot path) --------------------

def _make_kernel(*, C1, C2, K1, M2, NT, TB):
    """Fused conv1+BN1+LReLU+conv2+BN2+LReLU+conv3 for a static geometry."""

    def kernel(p1_ref, w1_ref, w2_ref, gs_ref, bnp_ref, w3m_ref, sel_ref, o_ref):
        w1 = w1_ref[...]                               # (K1, C1) bf16
        w1f = w1.astype(jnp.float32)

        # ---- BatchNorm-1 statistics from the host-side patch mean / Gram:
        #      mean = pbar^T W1,  E[x^2]_c = sum_k W1[k,c] * (G @ W1)[k,c]
        gram = gs_ref[:, :K1]                          # (K1, K1) f32
        pbar = gs_ref[:, K1:K1 + 1]                    # (K1, 1)  f32
        mean1 = jnp.sum(pbar * w1f, axis=0, keepdims=True)               # (1, C1)
        ex2 = jnp.sum(w1f * jnp.dot(gram, w1f,
                                    preferred_element_type=jnp.float32),
                      axis=0, keepdims=True)                              # (1, C1)
        var1 = ex2 - mean1 * mean1
        scale1 = jax.lax.rsqrt(var1 + EPS) * bnp_ref[0:1, :C1]
        shift1 = bnp_ref[1:2, :C1] - mean1 * scale1

        # ---- blocks 1+2 fused per block-2 tap: conv1 matmul -> BN1+LeakyReLU
        #      -> bf16 -> conv2 tap matmul, accumulated in f32.  No gathers,
        #      no scratch: every slice start t*TB is tile aligned.
        x2 = jnp.zeros((M2, C2), jnp.float32)
        for t in range(NT):
            x1 = jnp.dot(p1_ref[t * TB:t * TB + M2, :], w1,
                         preferred_element_type=jnp.float32)              # (M2, C1)
            y1 = x1 * scale1 + shift1
            a1 = jnp.maximum(y1, NEG_SLOPE * y1).astype(jnp.bfloat16)     # LeakyReLU
            x2 = x2 + jnp.dot(a1, w2_ref[t],
                              preferred_element_type=jnp.float32)         # (M2, C2)

        # ---- BatchNorm-2 (one-pass sum / sum-sq stats) + LeakyReLU
        inv_m2 = 1.0 / M2
        mean2 = jnp.sum(x2, axis=0, keepdims=True) * inv_m2
        var2 = jnp.sum(x2 * x2, axis=0, keepdims=True) * inv_m2 - mean2 * mean2
        scale2 = jax.lax.rsqrt(var2 + EPS) * bnp_ref[2:3, :C2]
        shift2 = bnp_ref[3:4, :C2] - mean2 * scale2
        y2 = x2 * scale2 + shift2
        a2 = jnp.maximum(y2, NEG_SLOPE * y2)                              # (M2, C2)

        # ---- block 3 (final 4x4 conv): masked per-row weights + batch-parity
        #      selector matmul + lane reduction.  b3 lives in bnp row 4.
        z = jnp.dot(sel_ref[...], a2 * w3m_ref[...],
                    preferred_element_type=jnp.float32)                   # (B, C2)
        o_ref[...] = jnp.sum(z, axis=1, keepdims=True) + bnp_ref[4:5, 0:1]

    return kernel


# -------------------- glue (plain JAX, fuses under jit) --------------------

def _full_spec(shape):
    # whole-array block (grid=(1,)): exempt from the (8,128) divisibility rule
    return pl.BlockSpec(shape, lambda i, _s=shape: (0,) * len(_s))


def discriminator_forward(image_nchw, params):
    """Fused Pallas forward. image_nchw: (B, im_chan, H, W) -> (B, 1)."""
    (w1, b1, g1, be1), (w2, b2, g2, be2), (w3, b3) = params
    del b1, b2   # bias right before train-mode BatchNorm cancels with the mean

    B, Cin, H, W = image_nchw.shape
    C1, C2 = w1.shape[0], w2.shape[0]
    H1, W1d = _conv_out(H), _conv_out(W)
    H2, W2d = _conv_out(H1), _conv_out(W1d)
    H3, W3d = _conv_out(H2), _conv_out(W2d)
    assert H3 == 1 and W3d == 1, "fused kernel assumes the final conv output is 1x1"

    K1 = KH * KW * Cin
    M1 = H1 * W1d * B            # unique conv-1 outputs (BN-1 statistics)
    M2 = H2 * W2d * B            # unique conv-2 outputs (BN-2 statistics)
    NT = KH * KW                 # number of block-2 taps
    TB = TAP_BLOCK
    assert M2 <= TB

    # ---------------- host-side prep (tiny arrays, fuses under jit) ----------
    x = jnp.transpose(image_nchw, (0, 2, 3, 1))                          # NHWC
    taps = [x[:, i:i + STRIDE * H1:STRIDE, j:j + STRIDE * W1d:STRIDE, :]
            for i in range(KH) for j in range(KW)]
    P1 = jnp.stack(taps, axis=3)                                         # (B,H1,W1,T,Cin)
    P1 = jnp.transpose(P1, (1, 2, 0, 3, 4)).reshape(H1, W1d, B, K1)

    # BN-1 stats inputs: mean + Gram matrix of the *bf16-rounded* patches, so
    # the in-kernel statistics match the bf16 MXU products exactly.
    p1q = P1.reshape(M1, K1).astype(jnp.bfloat16).astype(jnp.float32)
    pbar = jnp.mean(p1q, axis=0).reshape(K1, 1)
    gram = jnp.dot(p1q.T, p1q, precision=jax.lax.Precision.HIGHEST) / M1
    gstats = jnp.concatenate([gram, pbar], axis=1)                       # (K1, K1+1)

    # Duplicated block-1 patches grouped so the rows feeding block-2 tap
    # (ki,kj) form one contiguous, tile-aligned row block.
    blocks = []
    for ki in range(KH):
        for kj in range(KW):
            blk = P1[ki:ki + STRIDE * H2:STRIDE,
                     kj:kj + STRIDE * W2d:STRIDE].reshape(M2, K1)
            blocks.append(jnp.pad(blk, ((0, TB - M2), (0, 0))))
    p1big = jnp.concatenate(blocks, axis=0).astype(jnp.bfloat16)         # (NT*TB, K1)

    # Weights in patch-major K order, bf16 for the MXU.
    w1_t = jnp.transpose(w1, (2, 3, 1, 0)).reshape(K1, C1).astype(jnp.bfloat16)
    w2_t = jnp.transpose(w2, (2, 3, 1, 0)).reshape(NT, C1, C2).astype(jnp.bfloat16)

    # Packed per-channel BN params + final bias: one small DMA instead of five.
    CW = max(C1, C2)

    def _row(v):
        v = v.astype(jnp.float32)
        return jnp.pad(v, (0, CW - v.shape[0])).reshape(1, CW)

    bnp = jnp.concatenate([_row(g1), _row(be1), _row(g2), _row(be2), _row(b3)],
                          axis=0)                                        # (5, CW)

    # Final 4x4 conv: masked per-row weight matrix (zero outside the window,
    # independent of batch) + batch-parity selector.
    w3hw = jnp.transpose(w3[0], (1, 2, 0))                               # (KH,KW,C2)
    w3m = jnp.zeros((H2, W2d, B, C2), jnp.float32)
    w3m = w3m.at[:KH, :KW, :, :].set(w3hw[:, :, None, :]).reshape(M2, C2)
    sel = (jnp.arange(M2)[None, :] % B == jnp.arange(B)[:, None]).astype(jnp.float32)

    kernel = _make_kernel(C1=C1, C2=C2, K1=K1, M2=M2, NT=NT, TB=TB)

    out = pl.pallas_call(
        kernel,
        grid=(1,),
        out_shape=jax.ShapeDtypeStruct((B, 1), jnp.float32),
        in_specs=[_full_spec((NT * TB, K1)),
                  _full_spec((K1, C1)),
                  _full_spec((NT, C1, C2)),
                  _full_spec((K1, K1 + 1)),
                  _full_spec((5, CW)),
                  _full_spec((M2, C2)),
                  _full_spec((B, M2))],
        out_specs=_full_spec((B, 1)),
        compiler_params=pltpu.CompilerParams(
            dimension_semantics=("arbitrary",)),
    )(p1big, w1_t, w2_t, gstats, bnp, w3m, sel)
    return out                                   # == disc_pred.view(len(x), -1)


# -------------------- reference (pure JAX, for verification) --------------------

def ref_forward(image_nchw, params):
    (w1, b1, g1, be1), (w2, b2, g2, be2), (w3, b3) = params

    def conv(x, w, b):
        y = jax.lax.conv_general_dilated(
            x, w, (2, 2), "VALID",
            dimension_numbers=("NCHW", "OIHW", "NCHW"),
            precision=jax.lax.Precision.HIGHEST)
        return y + b[None, :, None, None]

    def bn_lrelu(y, g, be):
        mean = y.mean(axis=(0, 2, 3), keepdims=True)
        var = jnp.mean(jnp.square(y - mean), axis=(0, 2, 3), keepdims=True)
        y = (y - mean) * jax.lax.rsqrt(var + EPS) * g[None, :, None, None] \
            + be[None, :, None, None]
        return jnp.where(y > 0, y, NEG_SLOPE * y)

    y = bn_lrelu(conv(image_nchw, w1, b1), g1, be1)
    y = bn_lrelu(conv(y, w2, b2), g2, be2)
    y = conv(y, w3, b3)
    return y.reshape(y.shape[0], -1)


# -------------------- deterministic parameter init --------------------

def init_params(key, im_chan=1, hidden_dim=32):
    ks = jax.random.split(key, 7)

    def conv_w(k, cout, cin):
        return 0.02 * jax.random.normal(k, (cout, cin, 4, 4), jnp.float32)

    def bias(k, c):
        return 0.01 * jax.random.normal(k, (c,), jnp.float32)

    w1 = conv_w(ks[0], hidden_dim, im_chan)
    b1 = bias(ks[1], hidden_dim)
    g1 = jnp.ones((hidden_dim,), jnp.float32)
    be1 = jnp.zeros((hidden_dim,), jnp.float32)

    w2 = conv_w(ks[2], hidden_dim * 2, hidden_dim)
    b2 = bias(ks[3], hidden_dim * 2)
    g2 = jnp.ones((hidden_dim * 2,), jnp.float32)
    be2 = jnp.zeros((hidden_dim * 2,), jnp.float32)

    w3 = conv_w(ks[4], 1, hidden_dim * 2)
    b3 = bias(ks[5], 1)

    return ((w1, b1, g1, be1), (w2, b2, g2, be2), (w3, b3))


if __name__ == "__main__":
    key = jax.random.PRNGKey(0)
    k_img, k_par = jax.random.split(key)

    B, IM_CHAN, HID, H, W = 2, 1, 32, 28, 28   # 28x28 -> 13 -> 5 -> 1
    image = jax.random.normal(k_img, (B, IM_CHAN, H, W), jnp.float32)
    params = init_params(k_par, im_chan=IM_CHAN, hidden_dim=HID)

    fwd = jax.jit(discriminator_forward)
    out = jax.block_until_ready(fwd(image, params))
    assert out.shape == (B, 1), out.shape

    ref = jax.block_until_ready(ref_forward(image, params))
    # tolerance reflects bf16 MXU inputs (f32 accumulation, f32 BN epilogue)
    np.testing.assert_allclose(np.asarray(out), np.asarray(ref),
                               rtol=5e-2, atol=3e-2)

    print("KERNEL_OK")
</pallas_src>

<mosaic_0001>
module attributes {stable_mosaic.version = 11 : i64} {
  func.func @kernel(%arg0: i32, %arg1: memref<1024x16xbf16, #tpu.memory_space<vmem>>, %arg2: memref<16x32xbf16, #tpu.memory_space<vmem>>, %arg3: memref<16x32x64xbf16, #tpu.memory_space<vmem>>, %arg4: memref<16x17xf32, #tpu.memory_space<vmem>>, %arg5: memref<5x64xf32, #tpu.memory_space<vmem>>, %arg6: memref<50x64xf32, #tpu.memory_space<vmem>>, %arg7: memref<2x50xf32, #tpu.memory_space<vmem>>, %arg8: memref<2x1xf32, #tpu.memory_space<vmem>>) attributes {dimension_semantics = [#tpu.dimension_semantics<arbitrary>], iteration_bounds = array<i64: 1>, scalar_prefetch = 0 : i64, scratch_operands = 0 : i64, tpu.core_type = #tpu.core_type<tc>, window_params = [{pipeline_mode = #tpu.pipeline_mode<synchronous>, transform_indices = @transform_0, window_bounds = array<i64: 1024, 16>}, {pipeline_mode = #tpu.pipeline_mode<synchronous>, transform_indices = @transform_1, window_bounds = array<i64: 16, 32>}, {pipeline_mode = #tpu.pipeline_mode<synchronous>, transform_indices = @transform_2, window_bounds = array<i64: 16, 32, 64>}, {pipeline_mode = #tpu.pipeline_mode<synchronous>, transform_indices = @transform_3, window_bounds = array<i64: 16, 17>}, {pipeline_mode = #tpu.pipeline_mode<synchronous>, transform_indices = @transform_4, window_bounds = array<i64: 5, 64>}, {pipeline_mode = #tpu.pipeline_mode<synchronous>, transform_indices = @transform_5, window_bounds = array<i64: 50, 64>}, {pipeline_mode = #tpu.pipeline_mode<synchronous>, transform_indices = @transform_6, window_bounds = array<i64: 2, 50>}, {pipeline_mode = #tpu.pipeline_mode<synchronous>, transform_indices = @transform_7, window_bounds = array<i64: 2, 1>}]} {
    %c0 = arith.constant 0 : index
    %c0_0 = arith.constant 0 : index
    %0 = vector.load %arg2[%c0, %c0_0] : memref<16x32xbf16, #tpu.memory_space<vmem>>, vector<16x32xbf16>
    %1 = arith.extf %0 : vector<16x32xbf16> to vector<16x32xf32>
    %c0_1 = arith.constant 0 : index
    %c0_2 = arith.constant 0 : index
    %2 = vector.load %arg4[%c0_1, %c0_2] : memref<16x17xf32, #tpu.memory_space<vmem>>, vector<16x16xf32>
    %c0_3 = arith.constant 0 : index
    %c16 = arith.constant 16 : index
    %3 = vector.load %arg4[%c0_3, %c16] : memref<16x17xf32, #tpu.memory_space<vmem>>, vector<16x1xf32>
    %4 = vector.broadcast %3 : vector<16x1xf32> to vector<16x32xf32>
    %5 = arith.mulf %4, %1 : vector<16x32xf32>
    %cst = arith.constant dense<0.000000e+00> : vector<32xf32>
    %6 = vector.multi_reduction <add>, %5, %cst [0] : vector<16x32xf32> to vector<32xf32>
    %7 = vector.shape_cast %6 : vector<32xf32> to vector<1x32xf32>
    %cst_4 = arith.constant dense<0.000000e+00> : vector<16x32xf32>
    %8 = tpu.matmul %2, %1, %cst_4 {dimension_numbers = #tpu.dot_dimension_numbers<[1], [0], [0], [1], [0, 0, 1, 1], [], []>} : vector<16x16xf32>, vector<16x32xf32>, vector<16x32xf32> -> vector<16x32xf32>
    %9 = arith.mulf %1, %8 : vector<16x32xf32>
    %cst_5 = arith.constant dense<0.000000e+00> : vector<32xf32>
    %10 = vector.multi_reduction <add>, %9, %cst_5 [0] : vector<16x32xf32> to vector<32xf32>
    %11 = vector.shape_cast %10 : vector<32xf32> to vector<1x32xf32>
    %12 = arith.mulf %7, %7 : vector<1x32xf32>
    %13 = arith.subf %11, %12 : vector<1x32xf32>
    %cst_6 = arith.constant 9.99999974E-6 : f32
    %14 = vector.broadcast %cst_6 : f32 to vector<1x32xf32>
    %15 = arith.addf %13, %14 : vector<1x32xf32>
    %16 = math.rsqrt %15 : vector<1x32xf32>
    %c0_7 = arith.constant 0 : index
    %c0_8 = arith.constant 0 : index
    %17 = vector.load %arg5[%c0_7, %c0_8] : memref<5x64xf32, #tpu.memory_space<vmem>>, vector<1x32xf32>
    %18 = arith.mulf %16, %17 : vector<1x32xf32>
    %c1 = arith.constant 1 : index
    %c0_9 = arith.constant 0 : index
    %19 = vector.load %arg5[%c1, %c0_9] : memref<5x64xf32, #tpu.memory_space<vmem>>, vector<1x32xf32>
    %20 = arith.mulf %7, %18 : vector<1x32xf32>
    %21 = arith.subf %19, %20 : vector<1x32xf32>
    %cst_10 = arith.constant 0.000000e+00 : f32
    %22 = vector.broadcast %cst_10 : f32 to vector<50x64xf32>
    %c0_11 = arith.constant 0 : index
    %c0_12 = arith.constant 0 : index
    %23 = vector.load %arg1[%c0_11, %c0_12] : memref<1024x16xbf16, #tpu.memory_space<vmem>>, vector<50x16xbf16>
    %cst_13 = arith.constant dense<0.000000e+00> : vector<50x32xf32>
    %24 = tpu.matmul %23, %0, %cst_13 {dimension_numbers = #tpu.dot_dimension_numbers<[1], [0], [0], [1], [0, 0, 1, 1], [], []>} : vector<50x16xbf16>, vector<16x32xbf16>, vector<50x32xf32> -> vector<50x32xf32>
    %25 = vector.broadcast %18 : vector<1x32xf32> to vector<50x32xf32>
    %26 = arith.mulf %24, %25 : vector<50x32xf32>
    %27 = vector.broadcast %21 : vector<1x32xf32> to vector<50x32xf32>
    %28 = arith.addf %26, %27 : vector<50x32xf32>
    %cst_14 = arith.constant 2.000000e-01 : f32
    %29 = vector.broadcast %cst_14 : f32 to vector<50x32xf32>
    %30 = arith.mulf %29, %28 : vector<50x32xf32>
    %31 = arith.maximumf %28, %30 : vector<50x32xf32>
    %32 = arith.truncf %31 : vector<50x32xf32> to vector<50x32xbf16>
    %c0_15 = arith.constant 0 : index
    %c0_16 = arith.constant 0 : index
    %c0_17 = arith.constant 0 : index
    %33 = vector.load %arg3[%c0_15, %c0_16, %c0_17] : memref<16x32x64xbf16, #tpu.memory_space<vmem>>, vector<1x32x64xbf16>
    %34 = vector.shape_cast %33 : vector<1x32x64xbf16> to vector<32x64xbf16>
    %cst_18 = arith.constant dense<0.000000e+00> : vector<50x64xf32>
    %35 = tpu.matmul %32, %34, %cst_18 {dimension_numbers = #tpu.dot_dimension_numbers<[1], [0], [0], [1], [0, 0, 1, 1], [], []>} : vector<50x32xbf16>, vector<32x64xbf16>, vector<50x64xf32> -> vector<50x64xf32>
    %36 = arith.addf %22, %35 : vector<50x64xf32>
    %c64 = arith.constant 64 : index
    %c0_19 = arith.constant 0 : index
    %37 = vector.load %arg1[%c64, %c0_19] : memref<1024x16xbf16, #tpu.memory_space<vmem>>, vector<50x16xbf16>
    %cst_20 = arith.constant dense<0.000000e+00> : vector<50x32xf32>
    %38 = tpu.matmul %37, %0, %cst_20 {dimension_numbers = #tpu.dot_dimension_numbers<[1], [0], [0], [1], [0, 0, 1, 1], [], []>} : vector<50x16xbf16>, vector<16x32xbf16>, vector<50x32xf32> -> vector<50x32xf32>
    %39 = vector.broadcast %18 : vector<1x32xf32> to vector<50x32xf32>
    %40 = arith.mulf %38, %39 : vector<50x32xf32>
    %41 = vector.broadcast %21 : vector<1x32xf32> to vector<50x32xf32>
    %42 = arith.addf %40, %41 : vector<50x32xf32>
    %cst_21 = arith.constant 2.000000e-01 : f32
    %43 = vector.broadcast %cst_21 : f32 to vector<50x32xf32>
    %44 = arith.mulf %43, %42 : vector<50x32xf32>
    %45 = arith.maximumf %42, %44 : vector<50x32xf32>
    %46 = arith.truncf %45 : vector<50x32xf32> to vector<50x32xbf16>
    %c1_22 = arith.constant 1 : index
    %c0_23 = arith.constant 0 : index
    %c0_24 = arith.constant 0 : index
    %47 = vector.load %arg3[%c1_22, %c0_23, %c0_24] : memref<16x32x64xbf16, #tpu.memory_space<vmem>>, vector<1x32x64xbf16>
    %48 = vector.shape_cast %47 : vector<1x32x64xbf16> to vector<32x64xbf16>
    %cst_25 = arith.constant dense<0.000000e+00> : vector<50x64xf32>
    %49 = tpu.matmul %46, %48, %cst_25 {dimension_numbers = #tpu.dot_dimension_numbers<[1], [0], [0], [1], [0, 0, 1, 1], [], []>} : vector<50x32xbf16>, vector<32x64xbf16>, vector<50x64xf32> -> vector<50x64xf32>
    %50 = arith.addf %36, %49 : vector<50x64xf32>
    %c128 = arith.constant 128 : index
    %c0_26 = arith.constant 0 : index
    %51 = vector.load %arg1[%c128, %c0_26] : memref<1024x16xbf16, #tpu.memory_space<vmem>>, vector<50x16xbf16>
    %cst_27 = arith.constant dense<0.000000e+00> : vector<50x32xf32>
    %52 = tpu.matmul %51, %0, %cst_27 {dimension_numbers = #tpu.dot_dimension_numbers<[1], [0], [0], [1], [0, 0, 1, 1], [], []>} : vector<50x16xbf16>, vector<16x32xbf16>, vector<50x32xf32> -> vector<50x32xf32>
    %53 = vector.broadcast %18 : vector<1x32xf32> to vector<50x32xf32>
    %54 = arith.mulf %52, %53 : vector<50x32xf32>
    %55 = vector.broadcast %21 : vector<1x32xf32> to vector<50x32xf32>
    %56 = arith.addf %54, %55 : vector<50x32xf32>
    %cst_28 = arith.constant 2.000000e-01 : f32
    %57 = vector.broadcast %cst_28 : f32 to vector<50x32xf32>
    %58 = arith.mulf %57, %56 : vector<50x32xf32>
    %59 = arith.maximumf %56, %58 : vector<50x32xf32>
    %60 = arith.truncf %59 : vector<50x32xf32> to vector<50x32xbf16>
    %c2 = arith.constant 2 : index
    %c0_29 = arith.constant 0 : index
    %c0_30 = arith.constant 0 : index
    %61 = vector.load %arg3[%c2, %c0_29, %c0_30] : memref<16x32x64xbf16, #tpu.memory_space<vmem>>, vector<1x32x64xbf16>
    %62 = vector.shape_cast %61 : vector<1x32x64xbf16> to vector<32x64xbf16>
    %cst_31 = arith.constant dense<0.000000e+00> : vector<50x64xf32>
    %63 = tpu.matmul %60, %62, %cst_31 {dimension_numbers = #tpu.dot_dimension_numbers<[1], [0], [0], [1], [0, 0, 1, 1], [], []>} : vector<50x32xbf16>, vector<32x64xbf16>, vector<50x64xf32> -> vector<50x64xf32>
    %64 = arith.addf %50, %63 : vector<50x64xf32>
    %c192 = arith.constant 192 : index
    %c0_32 = arith.constant 0 : index
    %65 = vector.load %arg1[%c192, %c0_32] : memref<1024x16xbf16, #tpu.memory_space<vmem>>, vector<50x16xbf16>
    %cst_33 = arith.constant dense<0.000000e+00> : vector<50x32xf32>
    %66 = tpu.matmul %65, %0, %cst_33 {dimension_numbers = #tpu.dot_dimension_numbers<[1], [0], [0], [1], [0, 0, 1, 1], [], []>} : vector<50x16xbf16>, vector<16x32xbf16>, vector<50x32xf32> -> vector<50x32xf32>
    %67 = vector.broadcast %18 : vector<1x32xf32> to vector<50x32xf32>
    %68 = arith.mulf %66, %67 : vector<50x32xf32>
    %69 = vector.broadcast %21 : vector<1x32xf32> to vector<50x32xf32>
    %70 = arith.addf %68, %69 : vector<50x32xf32>
    %cst_34 = arith.constant 2.000000e-01 : f32
    %71 = vector.broadcast %cst_34 : f32 to vector<50x32xf32>
    %72 = arith.mulf %71, %70 : vector<50x32xf32>
    %73 = arith.maximumf %70, %72 : vector<50x32xf32>
    %74 = arith.truncf %73 : vector<50x32xf32> to vector<50x32xbf16>
    %c3 = arith.constant 3 : index
    %c0_35 = arith.constant 0 : index
    %c0_36 = arith.constant 0 : index
    %75 = vector.load %arg3[%c3, %c0_35, %c0_36] : memref<16x32x64xbf16, #tpu.memory_space<vmem>>, vector<1x32x64xbf16>
    %76 = vector.shape_cast %75 : vector<1x32x64xbf16> to vector<32x64xbf16>
    %cst_37 = arith.constant dense<0.000000e+00> : vector<50x64xf32>
    %77 = tpu.matmul %74, %76, %cst_37 {dimension_numbers = #tpu.dot_dimension_numbers<[1], [0], [0], [1], [0, 0, 1, 1], [], []>} : vector<50x32xbf16>, vector<32x64xbf16>, vector<50x64xf32> -> vector<50x64xf32>
    %78 = arith.addf %64, %77 : vector<50x64xf32>
    %c256 = arith.constant 256 : index
    %c0_38 = arith.constant 0 : index
    %79 = vector.load %arg1[%c256, %c0_38] : memref<1024x16xbf16, #tpu.memory_space<vmem>>, vector<50x16xbf16>
    %cst_39 = arith.constant dense<0.000000e+00> : vector<50x32xf32>
    %80 = tpu.matmul %79, %0, %cst_39 {dimension_numbers = #tpu.dot_dimension_numbers<[1], [0], [0], [1], [0, 0, 1, 1], [], []>} : vector<50x16xbf16>, vector<16x32xbf16>, vector<50x32xf32> -> vector<50x32xf32>
    %81 = vector.broadcast %18 : vector<1x32xf32> to vector<50x32xf32>
    %82 = arith.mulf %80, %81 : vector<50x32xf32>
    %83 = vector.broadcast %21 : vector<1x32xf32> to vector<50x32xf32>
    %84 = arith.addf %82, %83 : vector<50x32xf32>
    %cst_40 = arith.constant 2.000000e-01 : f32
    %85 = vector.broadcast %cst_40 : f32 to vector<50x32xf32>
    %86 = arith.mulf %85, %84 : vector<50x32xf32>
    %87 = arith.maximumf %84, %86 : vector<50x32xf32>
    %88 = arith.truncf %87 : vector<50x32xf32> to vector<50x32xbf16>
    %c4 = arith.constant 4 : index
    %c0_41 = arith.constant 0 : index
    %c0_42 = arith.constant 0 : index
    %89 = vector.load %arg3[%c4, %c0_41, %c0_42] : memref<16x32x64xbf16, #tpu.memory_space<vmem>>, vector<1x32x64xbf16>
    %90 = vector.shape_cast %89 : vector<1x32x64xbf16> to vector<32x64xbf16>
    %cst_43 = arith.constant dense<0.000000e+00> : vector<50x64xf32>
    %91 = tpu.matmul %88, %90, %cst_43 {dimension_numbers = #tpu.dot_dimension_numbers<[1], [0], [0], [1], [0, 0, 1, 1], [], []>} : vector<50x32xbf16>, vector<32x64xbf16>, vector<50x64xf32> -> vector<50x64xf32>
    %92 = arith.addf %78, %91 : vector<50x64xf32>
    %c320 = arith.constant 320 : index
    %c0_44 = arith.constant 0 : index
    %93 = vector.load %arg1[%c320, %c0_44] : memref<1024x16xbf16, #tpu.memory_space<vmem>>, vector<50x16xbf16>
    %cst_45 = arith.constant dense<0.000000e+00> : vector<50x32xf32>
    %94 = tpu.matmul %93, %0, %cst_45 {dimension_numbers = #tpu.dot_dimension_numbers<[1], [0], [0], [1], [0, 0, 1, 1], [], []>} : vector<50x16xbf16>, vector<16x32xbf16>, vector<50x32xf32> -> vector<50x32xf32>
    %95 = vector.broadcast %18 : vector<1x32xf32> to vector<50x32xf32>
    %96 = arith.mulf %94, %95 : vector<50x32xf32>
    %97 = vector.broadcast %21 : vector<1x32xf32> to vector<50x32xf32>
    %98 = arith.addf %96, %97 : vector<50x32xf32>
    %cst_46 = arith.constant 2.000000e-01 : f32
    %99 = vector.broadcast %cst_46 : f32 to vector<50x32xf32>
    %100 = arith.mulf %99, %98 : vector<50x32xf32>
    %101 = arith.maximumf %98, %100 : vector<50x32xf32>
    %102 = arith.truncf %101 : vector<50x32xf32> to vector<50x32xbf16>
    %c5 = arith.constant 5 : index
    %c0_47 = arith.constant 0 : index
    %c0_48 = arith.constant 0 : index
    %103 = vector.load %arg3[%c5, %c0_47, %c0_48] : memref<16x32x64xbf16, #tpu.memory_space<vmem>>, vector<1x32x64xbf16>
    %104 = vector.shape_cast %103 : vector<1x32x64xbf16> to vector<32x64xbf16>
    %cst_49 = arith.constant dense<0.000000e+00> : vector<50x64xf32>
    %105 = tpu.matmul %102, %104, %cst_49 {dimension_numbers = #tpu.dot_dimension_numbers<[1], [0], [0], [1], [0, 0, 1, 1], [], []>} : vector<50x32xbf16>, vector<32x64xbf16>, vector<50x64xf32> -> vector<50x64xf32>
    %106 = arith.addf %92, %105 : vector<50x64xf32>
    %c384 = arith.constant 384 : index
    %c0_50 = arith.constant 0 : index
    %107 = vector.load %arg1[%c384, %c0_50] : memref<1024x16xbf16, #tpu.memory_space<vmem>>, vector<50x16xbf16>
    %cst_51 = arith.constant dense<0.000000e+00> : vector<50x32xf32>
    %108 = tpu.matmul %107, %0, %cst_51 {dimension_numbers = #tpu.dot_dimension_numbers<[1], [0], [0], [1], [0, 0, 1, 1], [], []>} : vector<50x16xbf16>, vector<16x32xbf16>, vector<50x32xf32> -> vector<50x32xf32>
    %109 = vector.broadcast %18 : vector<1x32xf32> to vector<50x32xf32>
    %110 = arith.mulf %108, %109 : vector<50x32xf32>
    %111 = vector.broadcast %21 : vector<1x32xf32> to vector<50x32xf32>
    %112 = arith.addf %110, %111 : vector<50x32xf32>
    %cst_52 = arith.constant 2.000000e-01 : f32
    %113 = vector.broadcast %cst_52 : f32 to vector<50x32xf32>
    %114 = arith.mulf %113, %112 : vector<50x32xf32>
    %115 = arith.maximumf %112, %114 : vector<50x32xf32>
    %116 = arith.truncf %115 : vector<50x32xf32> to vector<50x32xbf16>
    %c6 = arith.constant 6 : index
    %c0_53 = arith.constant 0 : index
    %c0_54 = arith.constant 0 : index
    %117 = vector.load %arg3[%c6, %c0_53, %c0_54] : memref<16x32x64xbf16, #tpu.memory_space<vmem>>, vector<1x32x64xbf16>
    %118 = vector.shape_cast %117 : vector<1x32x64xbf16> to vector<32x64xbf16>
    %cst_55 = arith.constant dense<0.000000e+00> : vector<50x64xf32>
    %119 = tpu.matmul %116, %118, %cst_55 {dimension_numbers = #tpu.dot_dimension_numbers<[1], [0], [0], [1], [0, 0, 1, 1], [], []>} : vector<50x32xbf16>, vector<32x64xbf16>, vector<50x64xf32> -> vector<50x64xf32>
    %120 = arith.addf %106, %119 : vector<50x64xf32>
    %c448 = arith.constant 448 : index
    %c0_56 = arith.constant 0 : index
    %121 = vector.load %arg1[%c448, %c0_56] : memref<1024x16xbf16, #tpu.memory_space<vmem>>, vector<50x16xbf16>
    %cst_57 = arith.constant dense<0.000000e+00> : vector<50x32xf32>
    %122 = tpu.matmul %121, %0, %cst_57 {dimension_numbers = #tpu.dot_dimension_numbers<[1], [0], [0], [1], [0, 0, 1, 1], [], []>} : vector<50x16xbf16>, vector<16x32xbf16>, vector<50x32xf32> -> vector<50x32xf32>
    %123 = vector.broadcast %18 : vector<1x32xf32> to vector<50x32xf32>
    %124 = arith.mulf %122, %123 : vector<50x32xf32>
    %125 = vector.broadcast %21 : vector<1x32xf32> to vector<50x32xf32>
    %126 = arith.addf %124, %125 : vector<50x32xf32>
    %cst_58 = arith.constant 2.000000e-01 : f32
    %127 = vector.broadcast %cst_58 : f32 to vector<50x32xf32>
    %128 = arith.mulf %127, %126 : vector<50x32xf32>
    %129 = arith.maximumf %126, %128 : vector<50x32xf32>
    %130 = arith.truncf %129 : vector<50x32xf32> to vector<50x32xbf16>
    %c7 = arith.constant 7 : index
    %c0_59 = arith.constant 0 : index
    %c0_60 = arith.constant 0 : index
    %131 = vector.load %arg3[%c7, %c0_59, %c0_60] : memref<16x32x64xbf16, #tpu.memory_space<vmem>>, vector<1x32x64xbf16>
    %132 = vector.shape_cast %131 : vector<1x32x64xbf16> to vector<32x64xbf16>
    %cst_61 = arith.constant dense<0.000000e+00> : vector<50x64xf32>
    %133 = tpu.matmul %130, %132, %cst_61 {dimension_numbers = #tpu.dot_dimension_numbers<[1], [0], [0], [1], [0, 0, 1, 1], [], []>} : vector<50x32xbf16>, vector<32x64xbf16>, vector<50x64xf32> -> vector<50x64xf32>
    %134 = arith.addf %120, %133 : vector<50x64xf32>
    %c512 = arith.constant 512 : index
    %c0_62 = arith.constant 0 : index
    %135 = vector.load %arg1[%c512, %c0_62] : memref<1024x16xbf16, #tpu.memory_space<vmem>>, vector<50x16xbf16>
    %cst_63 = arith.constant dense<0.000000e+00> : vector<50x32xf32>
    %136 = tpu.matmul %135, %0, %cst_63 {dimension_numbers = #tpu.dot_dimension_numbers<[1], [0], [0], [1], [0, 0, 1, 1], [], []>} : vector<50x16xbf16>, vector<16x32xbf16>, vector<50x32xf32> -> vector<50x32xf32>
    %137 = vector.broadcast %18 : vector<1x32xf32> to vector<50x32xf32>
    %138 = arith.mulf %136, %137 : vector<50x32xf32>
    %139 = vector.broadcast %21 : vector<1x32xf32> to vector<50x32xf32>
    %140 = arith.addf %138, %139 : vector<50x32xf32>
    %cst_64 = arith.constant 2.000000e-01 : f32
    %141 = vector.broadcast %cst_64 : f32 to vector<50x32xf32>
    %142 = arith.mulf %141, %140 : vector<50x32xf32>
    %143 = arith.maximumf %140, %142 : vector<50x32xf32>
    %144 = arith.truncf %143 : vector<50x32xf32> to vector<50x32xbf16>
    %c8 = arith.constant 8 : index
    %c0_65 = arith.constant 0 : index
    %c0_66 = arith.constant 0 : index
    %145 = vector.load %arg3[%c8, %c0_65, %c0_66] : memref<16x32x64xbf16, #tpu.memory_space<vmem>>, vector<1x32x64xbf16>
    %146 = vector.shape_cast %145 : vector<1x32x64xbf16> to vector<32x64xbf16>
    %cst_67 = arith.constant dense<0.000000e+00> : vector<50x64xf32>
    %147 = tpu.matmul %144, %146, %cst_67 {dimension_numbers = #tpu.dot_dimension_numbers<[1], [0], [0], [1], [0, 0, 1, 1], [], []>} : vector<50x32xbf16>, vector<32x64xbf16>, vector<50x64xf32> -> vector<50x64xf32>
    %148 = arith.addf %134, %147 : vector<50x64xf32>
    %c576 = arith.constant 576 : index
    %c0_68 = arith.constant 0 : index
    %149 = vector.load %arg1[%c576, %c0_68] : memref<1024x16xbf16, #tpu.memory_space<vmem>>, vector<50x16xbf16>
    %cst_69 = arith.constant dense<0.000000e+00> : vector<50x32xf32>
    %150 = tpu.matmul %149, %0, %cst_69 {dimension_numbers = #tpu.dot_dimension_numbers<[1], [0], [0], [1], [0, 0, 1, 1], [], []>} : vector<50x16xbf16>, vector<16x32xbf16>, vector<50x32xf32> -> vector<50x32xf32>
    %151 = vector.broadcast %18 : vector<1x32xf32> to vector<50x32xf32>
    %152 = arith.mulf %150, %151 : vector<50x32xf32>
    %153 = vector.broadcast %21 : vector<1x32xf32> to vector<50x32xf32>
    %154 = arith.addf %152, %153 : vector<50x32xf32>
    %cst_70 = arith.constant 2.000000e-01 : f32
    %155 = vector.broadcast %cst_70 : f32 to vector<50x32xf32>
    %156 = arith.mulf %155, %154 : vector<50x32xf32>
    %157 = arith.maximumf %154, %156 : vector<50x32xf32>
    %158 = arith.truncf %157 : vector<50x32xf32> to vector<50x32xbf16>
    %c9 = arith.constant 9 : index
    %c0_71 = arith.constant 0 : index
    %c0_72 = arith.constant 0 : index
    %159 = vector.load %arg3[%c9, %c0_71, %c0_72] : memref<16x32x64xbf16, #tpu.memory_space<vmem>>, vector<1x32x64xbf16>
    %160 = vector.shape_cast %159 : vector<1x32x64xbf16> to vector<32x64xbf16>
    %cst_73 = arith.constant dense<0.000000e+00> : vector<50x64xf32>
    %161 = tpu.matmul %158, %160, %cst_73 {dimension_numbers = #tpu.dot_dimension_numbers<[1], [0], [0], [1], [0, 0, 1, 1], [], []>} : vector<50x32xbf16>, vector<32x64xbf16>, vector<50x64xf32> -> vector<50x64xf32>
    %162 = arith.addf %148, %161 : vector<50x64xf32>
    %c640 = arith.constant 640 : index
    %c0_74 = arith.constant 0 : index
    %163 = vector.load %arg1[%c640, %c0_74] : memref<1024x16xbf16, #tpu.memory_space<vmem>>, vector<50x16xbf16>
    %cst_75 = arith.constant dense<0.000000e+00> : vector<50x32xf32>
    %164 = tpu.matmul %163, %0, %cst_75 {dimension_numbers = #tpu.dot_dimension_numbers<[1], [0], [0], [1], [0, 0, 1, 1], [], []>} : vector<50x16xbf16>, vector<16x32xbf16>, vector<50x32xf32> -> vector<50x32xf32>
    %165 = vector.broadcast %18 : vector<1x32xf32> to vector<50x32xf32>
    %166 = arith.mulf %164, %165 : vector<50x32xf32>
    %167 = vector.broadcast %21 : vector<1x32xf32> to vector<50x32xf32>
    %168 = arith.addf %166, %167 : vector<50x32xf32>
    %cst_76 = arith.constant 2.000000e-01 : f32
    %169 = vector.broadcast %cst_76 : f32 to vector<50x32xf32>
    %170 = arith.mulf %169, %168 : vector<50x32xf32>
    %171 = arith.maximumf %168, %170 : vector<50x32xf32>
    %172 = arith.truncf %171 : vector<50x32xf32> to vector<50x32xbf16>
    %c10 = arith.constant 10 : index
    %c0_77 = arith.constant 0 : index
    %c0_78 = arith.constant 0 : index
    %173 = vector.load %arg3[%c10, %c0_77, %c0_78] : memref<16x32x64xbf16, #tpu.memory_space<vmem>>, vector<1x32x64xbf16>
    %174 = vector.shape_cast %173 : vector<1x32x64xbf16> to vector<32x64xbf16>
    %cst_79 = arith.constant dense<0.000000e+00> : vector<50x64xf32>
    %175 = tpu.matmul %172, %174, %cst_79 {dimension_numbers = #tpu.dot_dimension_numbers<[1], [0], [0], [1], [0, 0, 1, 1], [], []>} : vector<50x32xbf16>, vector<32x64xbf16>, vector<50x64xf32> -> vector<50x64xf32>
    %176 = arith.addf %162, %175 : vector<50x64xf32>
    %c704 = arith.constant 704 : index
    %c0_80 = arith.constant 0 : index
    %177 = vector.load %arg1[%c704, %c0_80] : memref<1024x16xbf16, #tpu.memory_space<vmem>>, vector<50x16xbf16>
    %cst_81 = arith.constant dense<0.000000e+00> : vector<50x32xf32>
    %178 = tpu.matmul %177, %0, %cst_81 {dimension_numbers = #tpu.dot_dimension_numbers<[1], [0], [0], [1], [0, 0, 1, 1], [], []>} : vector<50x16xbf16>, vector<16x32xbf16>, vector<50x32xf32> -> vector<50x32xf32>
    %179 = vector.broadcast %18 : vector<1x32xf32> to vector<50x32xf32>
    %180 = arith.mulf %178, %179 : vector<50x32xf32>
    %181 = vector.broadcast %21 : vector<1x32xf32> to vector<50x32xf32>
    %182 = arith.addf %180, %181 : vector<50x32xf32>
    %cst_82 = arith.constant 2.000000e-01 : f32
    %183 = vector.broadcast %cst_82 : f32 to vector<50x32xf32>
    %184 = arith.mulf %183, %182 : vector<50x32xf32>
    %185 = arith.maximumf %182, %184 : vector<50x32xf32>
    %186 = arith.truncf %185 : vector<50x32xf32> to vector<50x32xbf16>
    %c11 = arith.constant 11 : index
    %c0_83 = arith.constant 0 : index
    %c0_84 = arith.constant 0 : index
    %187 = vector.load %arg3[%c11, %c0_83, %c0_84] : memref<16x32x64xbf16, #tpu.memory_space<vmem>>, vector<1x32x64xbf16>
    %188 = vector.shape_cast %187 : vector<1x32x64xbf16> to vector<32x64xbf16>
    %cst_85 = arith.constant dense<0.000000e+00> : vector<50x64xf32>
    %189 = tpu.matmul %186, %188, %cst_85 {dimension_numbers = #tpu.dot_dimension_numbers<[1], [0], [0], [1], [0, 0, 1, 1], [], []>} : vector<50x32xbf16>, vector<32x64xbf16>, vector<50x64xf32> -> vector<50x64xf32>
    %190 = arith.addf %176, %189 : vector<50x64xf32>
    %c768 = arith.constant 768 : index
    %c0_86 = arith.constant 0 : index
    %191 = vector.load %arg1[%c768, %c0_86] : memref<1024x16xbf16, #tpu.memory_space<vmem>>, vector<50x16xbf16>
    %cst_87 = arith.constant dense<0.000000e+00> : vector<50x32xf32>
    %192 = tpu.matmul %191, %0, %cst_87 {dimension_numbers = #tpu.dot_dimension_numbers<[1], [0], [0], [1], [0, 0, 1, 1], [], []>} : vector<50x16xbf16>, vector<16x32xbf16>, vector<50x32xf32> -> vector<50x32xf32>
    %193 = vector.broadcast %18 : vector<1x32xf32> to vector<50x32xf32>
    %194 = arith.mulf %192, %193 : vector<50x32xf32>
    %195 = vector.broadcast %21 : vector<1x32xf32> to vector<50x32xf32>
    %196 = arith.addf %194, %195 : vector<50x32xf32>
    %cst_88 = arith.constant 2.000000e-01 : f32
    %197 = vector.broadcast %cst_88 : f32 to vector<50x32xf32>
    %198 = arith.mulf %197, %196 : vector<50x32xf32>
    %199 = arith.maximumf %196, %198 : vector<50x32xf32>
    %200 = arith.truncf %199 : vector<50x32xf32> to vector<50x32xbf16>
    %c12 = arith.constant 12 : index
    %c0_89 = arith.constant 0 : index
    %c0_90 = arith.constant 0 : index
    %201 = vector.load %arg3[%c12, %c0_89, %c0_90] : memref<16x32x64xbf16, #tpu.memory_space<vmem>>, vector<1x32x64xbf16>
    %202 = vector.shape_cast %201 : vector<1x32x64xbf16> to vector<32x64xbf16>
    %cst_91 = arith.constant dense<0.000000e+00> : vector<50x64xf32>
    %203 = tpu.matmul %200, %202, %cst_91 {dimension_numbers = #tpu.dot_dimension_numbers<[1], [0], [0], [1], [0, 0, 1, 1], [], []>} : vector<50x32xbf16>, vector<32x64xbf16>, vector<50x64xf32> -> vector<50x64xf32>
    %204 = arith.addf %190, %203 : vector<50x64xf32>
    %c832 = arith.constant 832 : index
    %c0_92 = arith.constant 0 : index
    %205 = vector.load %arg1[%c832, %c0_92] : memref<1024x16xbf16, #tpu.memory_space<vmem>>, vector<50x16xbf16>
    %cst_93 = arith.constant dense<0.000000e+00> : vector<50x32xf32>
    %206 = tpu.matmul %205, %0, %cst_93 {dimension_numbers = #tpu.dot_dimension_numbers<[1], [0], [0], [1], [0, 0, 1, 1], [], []>} : vector<50x16xbf16>, vector<16x32xbf16>, vector<50x32xf32> -> vector<50x32xf32>
    %207 = vector.broadcast %18 : vector<1x32xf32> to vector<50x32xf32>
    %208 = arith.mulf %206, %207 : vector<50x32xf32>
    %209 = vector.broadcast %21 : vector<1x32xf32> to vector<50x32xf32>
    %210 = arith.addf %208, %209 : vector<50x32xf32>
    %cst_94 = arith.constant 2.000000e-01 : f32
    %211 = vector.broadcast %cst_94 : f32 to vector<50x32xf32>
    %212 = arith.mulf %211, %210 : vector<50x32xf32>
    %213 = arith.maximumf %210, %212 : vector<50x32xf32>
    %214 = arith.truncf %213 : vector<50x32xf32> to vector<50x32xbf16>
    %c13 = arith.constant 13 : index
    %c0_95 = arith.constant 0 : index
    %c0_96 = arith.constant 0 : index
    %215 = vector.load %arg3[%c13, %c0_95, %c0_96] : memref<16x32x64xbf16, #tpu.memory_space<vmem>>, vector<1x32x64xbf16>
    %216 = vector.shape_cast %215 : vector<1x32x64xbf16> to vector<32x64xbf16>
    %cst_97 = arith.constant dense<0.000000e+00> : vector<50x64xf32>
    %217 = tpu.matmul %214, %216, %cst_97 {dimension_numbers = #tpu.dot_dimension_numbers<[1], [0], [0], [1], [0, 0, 1, 1], [], []>} : vector<50x32xbf16>, vector<32x64xbf16>, vector<50x64xf32> -> vector<50x64xf32>
    %218 = arith.addf %204, %217 : vector<50x64xf32>
    %c896 = arith.constant 896 : index
    %c0_98 = arith.constant 0 : index
    %219 = vector.load %arg1[%c896, %c0_98] : memref<1024x16xbf16, #tpu.memory_space<vmem>>, vector<50x16xbf16>
    %cst_99 = arith.constant dense<0.000000e+00> : vector<50x32xf32>
    %220 = tpu.matmul %219, %0, %cst_99 {dimension_numbers = #tpu.dot_dimension_numbers<[1], [0], [0], [1], [0, 0, 1, 1], [], []>} : vector<50x16xbf16>, vector<16x32xbf16>, vector<50x32xf32> -> vector<50x32xf32>
    %221 = vector.broadcast %18 : vector<1x32xf32> to vector<50x32xf32>
    %222 = arith.mulf %220, %221 : vector<50x32xf32>
    %223 = vector.broadcast %21 : vector<1x32xf32> to vector<50x32xf32>
    %224 = arith.addf %222, %223 : vector<50x32xf32>
    %cst_100 = arith.constant 2.000000e-01 : f32
    %225 = vector.broadcast %cst_100 : f32 to vector<50x32xf32>
    %226 = arith.mulf %225, %224 : vector<50x32xf32>
    %227 = arith.maximumf %224, %226 : vector<50x32xf32>
    %228 = arith.truncf %227 : vector<50x32xf32> to vector<50x32xbf16>
    %c14 = arith.constant 14 : index
    %c0_101 = arith.constant 0 : index
    %c0_102 = arith.constant 0 : index
    %229 = vector.load %arg3[%c14, %c0_101, %c0_102] : memref<16x32x64xbf16, #tpu.memory_space<vmem>>, vector<1x32x64xbf16>
    %230 = vector.shape_cast %229 : vector<1x32x64xbf16> to vector<32x64xbf16>
    %cst_103 = arith.constant dense<0.000000e+00> : vector<50x64xf32>
    %231 = tpu.matmul %228, %230, %cst_103 {dimension_numbers = #tpu.dot_dimension_numbers<[1], [0], [0], [1], [0, 0, 1, 1], [], []>} : vector<50x32xbf16>, vector<32x64xbf16>, vector<50x64xf32> -> vector<50x64xf32>
    %232 = arith.addf %218, %231 : vector<50x64xf32>
    %c960 = arith.constant 960 : index
    %c0_104 = arith.constant 0 : index
    %233 = vector.load %arg1[%c960, %c0_104] : memref<1024x16xbf16, #tpu.memory_space<vmem>>, vector<50x16xbf16>
    %cst_105 = arith.constant dense<0.000000e+00> : vector<50x32xf32>
    %234 = tpu.matmul %233, %0, %cst_105 {dimension_numbers = #tpu.dot_dimension_numbers<[1], [0], [0], [1], [0, 0, 1, 1], [], []>} : vector<50x16xbf16>, vector<16x32xbf16>, vector<50x32xf32> -> vector<50x32xf32>
    %235 = vector.broadcast %18 : vector<1x32xf32> to vector<50x32xf32>
    %236 = arith.mulf %234, %235 : vector<50x32xf32>
    %237 = vector.broadcast %21 : vector<1x32xf32> to vector<50x32xf32>
    %238 = arith.addf %236, %237 : vector<50x32xf32>
    %cst_106 = arith.constant 2.000000e-01 : f32
    %239 = vector.broadcast %cst_106 : f32 to vector<50x32xf32>
    %240 = arith.mulf %239, %238 : vector<50x32xf32>
    %241 = arith.maximumf %238, %240 : vector<50x32xf32>
    %242 = arith.truncf %241 : vector<50x32xf32> to vector<50x32xbf16>
    %c15 = arith.constant 15 : index
    %c0_107 = arith.constant 0 : index
    %c0_108 = arith.constant 0 : index
    %243 = vector.load %arg3[%c15, %c0_107, %c0_108] : memref<16x32x64xbf16, #tpu.memory_space<vmem>>, vector<1x32x64xbf16>
    %244 = vector.shape_cast %243 : vector<1x32x64xbf16> to vector<32x64xbf16>
    %cst_109 = arith.constant dense<0.000000e+00> : vector<50x64xf32>
    %245 = tpu.matmul %242, %244, %cst_109 {dimension_numbers = #tpu.dot_dimension_numbers<[1], [0], [0], [1], [0, 0, 1, 1], [], []>} : vector<50x32xbf16>, vector<32x64xbf16>, vector<50x64xf32> -> vector<50x64xf32>
    %246 = arith.addf %232, %245 : vector<50x64xf32>
    %cst_110 = arith.constant dense<0.000000e+00> : vector<64xf32>
    %247 = vector.multi_reduction <add>, %246, %cst_110 [0] : vector<50x64xf32> to vector<64xf32>
    %248 = vector.shape_cast %247 : vector<64xf32> to vector<1x64xf32>
    %cst_111 = arith.constant 2.000000e-02 : f32
    %249 = vector.broadcast %cst_111 : f32 to vector<1x64xf32>
    %250 = arith.mulf %248, %249 : vector<1x64xf32>
    %251 = arith.mulf %246, %246 : vector<50x64xf32>
    %cst_112 = arith.constant dense<0.000000e+00> : vector<64xf32>
    %252 = vector.multi_reduction <add>, %251, %cst_112 [0] : vector<50x64xf32> to vector<64xf32>
    %253 = vector.shape_cast %252 : vector<64xf32> to vector<1x64xf32>
    %cst_113 = arith.constant 2.000000e-02 : f32
    %254 = vector.broadcast %cst_113 : f32 to vector<1x64xf32>
    %255 = arith.mulf %253, %254 : vector<1x64xf32>
    %256 = arith.mulf %250, %250 : vector<1x64xf32>
    %257 = arith.subf %255, %256 : vector<1x64xf32>
    %cst_114 = arith.constant 9.99999974E-6 : f32
    %258 = vector.broadcast %cst_114 : f32 to vector<1x64xf32>
    %259 = arith.addf %257, %258 : vector<1x64xf32>
    %260 = math.rsqrt %259 : vector<1x64xf32>
    %c2_115 = arith.constant 2 : index
    %c0_116 = arith.constant 0 : index
    %261 = vector.load %arg5[%c2_115, %c0_116] : memref<5x64xf32, #tpu.memory_space<vmem>>, vector<1x64xf32>
    %262 = arith.mulf %260, %261 : vector<1x64xf32>
    %c3_117 = arith.constant 3 : index
    %c0_118 = arith.constant 0 : index
    %263 = vector.load %arg5[%c3_117, %c0_118] : memref<5x64xf32, #tpu.memory_space<vmem>>, vector<1x64xf32>
    %264 = arith.mulf %250, %262 : vector<1x64xf32>
    %265 = arith.subf %263, %264 : vector<1x64xf32>
    %266 = vector.broadcast %262 : vector<1x64xf32> to vector<50x64xf32>
    %267 = arith.mulf %246, %266 : vector<50x64xf32>
    %268 = vector.broadcast %265 : vector<1x64xf32> to vector<50x64xf32>
    %269 = arith.addf %267, %268 : vector<50x64xf32>
    %cst_119 = arith.constant 2.000000e-01 : f32
    %270 = vector.broadcast %cst_119 : f32 to vector<50x64xf32>
    %271 = arith.mulf %270, %269 : vector<50x64xf32>
    %272 = arith.maximumf %269, %271 : vector<50x64xf32>
    %c0_120 = arith.constant 0 : index
    %c0_121 = arith.constant 0 : index
    %273 = vector.load %arg7[%c0_120, %c0_121] : memref<2x50xf32, #tpu.memory_space<vmem>>, vector<2x50xf32>
    %c0_122 = arith.constant 0 : index
    %c0_123 = arith.constant 0 : index
    %274 = vector.load %arg6[%c0_122, %c0_123] : memref<50x64xf32, #tpu.memory_space<vmem>>, vector<50x64xf32>
    %275 = arith.mulf %272, %274 : vector<50x64xf32>
    %cst_124 = arith.constant dense<0.000000e+00> : vector<2x64xf32>
    %276 = tpu.matmul %273, %275, %cst_124 {dimension_numbers = #tpu.dot_dimension_numbers<[1], [0], [0], [1], [0, 0, 1, 1], [], []>} : vector<2x50xf32>, vector<50x64xf32>, vector<2x64xf32> -> vector<2x64xf32>
    %cst_125 = arith.constant dense<0.000000e+00> : vector<2xf32>
    %277 = vector.multi_reduction <add>, %276, %cst_125 [1] : vector<2x64xf32> to vector<2xf32>
    %278 = vector.shape_cast %277 : vector<2xf32> to vector<2x1xf32>
    %c4_126 = arith.constant 4 : index
    %c0_127 = arith.constant 0 : index
    %279 = vector.load %arg5[%c4_126, %c0_127] : memref<5x64xf32, #tpu.memory_space<vmem>>, vector<1x1xf32>
    %280 = vector.broadcast %279 : vector<1x1xf32> to vector<2x1xf32>
    %281 = arith.addf %278, %280 : vector<2x1xf32>
    %c0_128 = arith.constant 0 : index
    %c0_129 = arith.constant 0 : index
    %282 = vector.load %arg8[%c0_128, %c0_129] : memref<2x1xf32, #tpu.memory_space<vmem>>, vector<2x1xf32>
    tpu.vector_store %arg8[%c0_128, %c0_129], %281 {strides = array<i32>} : memref<2x1xf32, #tpu.memory_space<vmem>>, vector<2x1xf32>,
    return
  }
  func.func @transform_0(%arg0: i32) -> (i32, i32) {
    %c0_i32 = arith.constant 0 : i32
    %c0_i32_0 = arith.constant 0 : i32
    %c0_i32_1 = arith.constant 0 : i32
    return %c0_i32, %c0_i32_0 : i32, i32
  }
  func.func @transform_1(%arg0: i32) -> (i32, i32) {
    %c0_i32 = arith.constant 0 : i32
    %c0_i32_0 = arith.constant 0 : i32
    %c0_i32_1 = arith.constant 0 : i32
    return %c0_i32, %c0_i32_0 : i32, i32
  }
  func.func @transform_2(%arg0: i32) -> (i32, i32, i32) {
    %c0_i32 = arith.constant 0 : i32
    %c0_i32_0 = arith.constant 0 : i32
    %c0_i32_1 = arith.constant 0 : i32
    %c0_i32_2 = arith.constant 0 : i32
    return %c0_i32, %c0_i32_0, %c0_i32_1 : i32, i32, i32
  }
  func.func @transform_3(%arg0: i32) -> (i32, i32) {
    %c0_i32 = arith.constant 0 : i32
    %c0_i32_0 = arith.constant 0 : i32
    %c0_i32_1 = arith.constant 0 : i32
    return %c0_i32, %c0_i32_0 : i32, i32
  }
  func.func @transform_4(%arg0: i32) -> (i32, i32) {
    %c0_i32 = arith.constant 0 : i32
    %c0_i32_0 = arith.constant 0 : i32
    %c0_i32_1 = arith.constant 0 : i32
    return %c0_i32, %c0_i32_0 : i32, i32
  }
  func.func @transform_5(%arg0: i32) -> (i32, i32) {
    %c0_i32 = arith.constant 0 : i32
    %c0_i32_0 = arith.constant 0 : i32
    %c0_i32_1 = arith.constant 0 : i32
    return %c0_i32, %c0_i32_0 : i32, i32
  }
  func.func @transform_6(%arg0: i32) -> (i32, i32) {
    %c0_i32 = arith.constant 0 : i32
    %c0_i32_0 = arith.constant 0 : i32
    %c0_i32_1 = arith.constant 0 : i32
    return %c0_i32, %c0_i32_0 : i32, i32
  }
  func.func @transform_7(%arg0: i32) -> (i32, i32) {
    %c0_i32 = arith.constant 0 : i32
    %c0_i32_0 = arith.constant 0 : i32
    %c0_i32_1 = arith.constant 0 : i32
    return %c0_i32, %c0_i32_0 : i32, i32
  }
}

</mosaic_0001>

<bundles_post_ra>
// kernel: discriminator_forward.1
= control target key start
LH: loop header
LB: loop body
LE: loop exit
PB: predicated region body
PF: predicated region fallthrough
CT: control target
= control target key end

     0   :  { %vm55_vm0 = vcmask 130048   ;;  %v5044_v2 = vmov 16   ;;  %vm45_vm1 = vcmask 261120   ;;  %v262_v61 = vlaneseq  ;;  %s5905_s1 = inlined_call_operand.vmem [shape: bf16[16,32], index: 1, kind: input, shape index: {}]   ;;  %s5906_s3 = inlined_call_operand.vmem [shape: f32[16,17], index: 3, kind: input, shape index: {}]   ;;  %s5907_s0 = inlined_call_operand.vmem [shape: bf16[1024,16], index: 0, kind: input, shape index: {}]   ;;  %s5908_s2 = inlined_call_operand.vmem [shape: bf16[16,32,64], index: 2, kind: input, shape index: {}]   ;;  %s5909_s4 = inlined_call_operand.vmem [shape: f32[5,64], index: 4, kind: input, shape index: {}]   ;;  %s5910_s5 = inlined_call_operand.vmem [shape: f32[50,64], index: 5, kind: input, shape index: {}]   ;;  %s5911_s6 = inlined_call_operand.vmem [shape: f32[2,50], index: 6, kind: input, shape index: {}]   ;;  %s5912_s7 = inlined_call_operand.vmem [shape: f32[2,1], index: 7, kind: output, shape index: {}]  }
   0x1   :  { %v5090_v0 = vld [vmem:[%s5905_s1] sm:$0xff]   ;;  %4941 = vset.pattern.permute.xlu0 %v5044_v2  ;;  %v32_v6 = vld [vmem:[%s5906_s3 + $0x8] sm:$0xff]  ;;  %v4947_v9 = vld [vmem:[%s5907_s0 + $0x10] sm:$0xff]   ;;  %vm5046_vm2 = vmmov 0   ;;  %vm3882_vm3 = vcmask 523264   ;;  %vm3894_vm4 = vcmask 517120  }
   0x2   :  { %v31_v1 = vld [vmem:[%s5906_s3] sm:$0xff]  ;;  %v30_v3 = vunpack.c.h.bf16 %v5090_v0  ;;  %v29_v4 = vunpack.c.l.bf16 %v5090_v0  ;;  %4569 = vmatprep.subr.bf16.mxu1 %v5090_v0  ;;  %v4945_v8 = vld [vmem:[%s5907_s0 + $0x8] sm:$0xff]   ;;  %v4948_v11 = vld [vmem:[%s5907_s0 + $0x30] sm:$0xff]   ;;  %v263_v62 = vshrl.u32 %v262_v61, 7  ;;  %vm3995_vm5 = vcmask 1041408  }
   0x3   :  { %4566 = vmatprep.mubr.msk.f32.mxu0 %vm55_vm0, %v31_v1  ;;  %v4943_v5 = vld [vmem:[%s5907_s0] sm:$0xff]   ;;  %35 = vperm.xlu0 %4941, %v31_v1   ;;  %v4946_v10 = vld [vmem:[%s5907_s0 + $0x28] sm:$0xff]   ;;  %v4949_v12 = vld [vmem:[%s5907_s0 + $0x18] ss:$0 sps:$4 sm:$0x11]   ;;  %vm3991_vm6 = vcmask 408576  }
   0x4   :  { %4562 = vmatprep.subr.mxu0 %v30_v3  ;;  %4570 = vmatpush3.bf16.msra.mxu1 %v5090_v0  ;;  %v4944_v7 = vld [vmem:[%s5907_s0 + $0x20] sm:$0xff]   ;;  %v4950_v13 = vld [vmem:[%s5907_s0 + $0x38] ss:$0 sps:$4 sm:$0x11]   ;;  %v4952_v15 = vld [vmem:[%s5908_s2 + $0x8] sm:$0xff]   ;;  %v5158_v1 = vsub.s32 0, %v263_v62 }
   0x5   :  { %4563 = vmatpush3.msra.mxu0 %v30_v3  ;;  %4571 = vmatprep.mubr.msk.bf16.mxu1 %vm55_vm0, %v4943_v5  ;;  %v4951_v14 = vld [vmem:[%s5908_s2 + $0x18] sm:$0xff]   ;;  %v4953_v16 = vld [vmem:[%s5908_s2 + $0x10] sm:$0xff]   ;;  %v4954_v17 = vld [vmem:[%s5908_s2] sm:$0xff]   ;;  %vm4078_vm7 = vcmask 1024  }
   0x6   :  { %4564 = vmatprep.subr.mxu0 %v29_v4  ;;  %4589 = vmatprep.subr.bf16.mxu1 %v4951_v14  ;;  %v150_v63 = vld [vmem:[%s5909_s4] sm:$0x1] }
   0x7   :  { %4565 = vmatpush3.msra.mxu0 %v29_v4  ;;  %40 = vperm.xlu0 %4941, %v32_v6  }
   0x8   :  { %4567 = vmatmul.mubr.msk.f32.vlgmr.msra.gmra.mxu0 %vm55_vm0, %v32_v6  ;;  %4579 = vmatprep.subr.bf16.mxu0 %v5090_v0 }
   0x9   :  { %4580 = vmatpush3.bf16.msra.mxu0 %v5090_v0  ;;  %4581 = vmatprep.mubr.msk.bf16.mxu0 %vm55_vm0, %v4944_v7 }
   0xa   :  { %4572 = vmatmul.mubr.msk.bf16.vlgmr.msra.gmra.mxu1 %vm55_vm0, %v4945_v8  ;;  %4601 = vmatprep.subr.bf16.mxu0 %v4952_v15 }
   0xb   :  { %4575 = vmatprep.mubr.msk.bf16.mxu1 %vm55_vm0, %v4947_v9  ;;  %4590 = vmatpush3.bf16.msra.mxu1 %v4951_v14 }
   0xc   :  { %4582 = vmatmul.mubr.msk.bf16.vlgmr.msra.gmra.mxu0 %vm55_vm0, %v4946_v10  ;;  %4591 = vmatprep.subr.bf16.mxu1 %v4953_v16 }
   0xd   :  { %4585 = vmatprep.mubr.msk.bf16.mxu0 %vm55_vm0, %v4948_v11  ;;  %4602 = vmatpush3.bf16.msra.mxu0 %v4952_v15 }
   0xe   :  { %4603 = vmatprep.subr.bf16.mxu0 %v4954_v17 }
   0xf   :  { %4592 = vmatpush3.bf16.msra.mxu1 %v4953_v16 }
  0x10   :  { %4613 = vmatprep.subr.bf16.mxu1 %v5090_v0 }
  0x11   :  { %4604 = vmatpush3.bf16.msra.mxu0 %v4954_v17 }
  0x12   :  { %4576 = vmatmul.mubr.msk.bf16.gmra.mxu1 %vm55_vm0, %v4949_v12 }
  0x14   :  { %4586 = vmatmul.mubr.msk.bf16.gmra.mxu0 %vm55_vm0, %v4950_v13 }
  0x7e   :  { %v36_v18 = vpop.permute.xlu0 %35 }
  0x7f   :  { %v43_v20 = vmul.f32 %v36_v18, %v29_v4 }
  0x81   :  { %v46_v22 = vsel %vm45_vm1, %v43_v20, 0.0 }
  0x82   :  { %v41_v19 = vpop.permute.xlu0 %40 }
  0x83   :  { %v44_v21 = vmul.f32 %v41_v19, %v30_v3 }
  0x85   :  { %v47_v23 = vsel %vm45_vm1, %v44_v21, 0.0 }
  0x86   :  { %v48_v24 = vadd.f32 %v47_v23, %v46_v22 }
  0x88   :  { %v49_v25 = vrot.slane %v48_v24, 4 }
  0x8a   :  { %v50_v26 = vadd.f32 %v49_v25, %v48_v24 }
  0x8c   :  { %v51_v29 = vrot.slane %v50_v26, 2 }
  0x8e   :  { %v52_v37 = vadd.f32 %v51_v29, %v50_v26 }
  0x90   :  { %v53_v44 = vrot.slane %v52_v37, 1 }
  0x92   :  { %v54_v51 = vadd.f32 %v53_v44, %v52_v37 }
  0x94   :  { %v146_v57 = vmul.f32 %v54_v51, %v54_v51 }
  0xc8   :  { %v4568_v27 = vpop.f32.mrf.mxu0 }
  0xc9   :  { %v136_v28 = vmul.f32 %v4568_v27, %v30_v3 }
  0xca   :  { %v126_v30 = vpop.f32.mrf.mxu0  ;;  %v4573_v31 = vpop.f32.mrf.mxu1 }
  0xcb   :  { %v135_v32 = vmul.f32 %v126_v30, %v29_v4  ;;  %v138_v35 = vsel %vm45_vm1, %v136_v28, 0.0  ;;  %v152_v4 = vld [vmem:[%s5909_s4 + $0x1] sm:$0x1] }
  0xcc   :  { %v4583_v33 = vpop.f32.mrf.mxu0  ;;  %v232_v34 = vpop.f32.mrf.mxu1 }
  0xcd   :  { %v137_v36 = vsel %vm45_vm1, %v135_v32, 0.0 }
  0xce   :  { %v139_v38 = vadd.f32 %v138_v35, %v137_v36  ;;  %v377_v39 = vpop.f32.mrf.mxu0  ;;  %v4574_v40 = vpop.f32.mrf.mxu1 }
  0xd0   :  { %v140_v41 = vrot.slane %v139_v38, 4  ;;  %v4584_v42 = vpop.f32.mrf.mxu0  ;;  %v235_v43 = vpop.f32.mrf.mxu1 }
  0xd2   :  { %v141_v45 = vadd.f32 %v140_v41, %v139_v38  ;;  %v380_v46 = vpop.f32.mrf.mxu0  ;;  %v4577_v47 = vpop.f32.mrf.mxu1 }
  0xd4   :  { %v142_v48 = vrot.slane %v141_v45, 2  ;;  %v4587_v49 = vpop.f32.mrf.mxu0  ;;  %v248_v50 = vpop.f32.mrf.mxu1 }
  0xd6   :  { %v143_v52 = vadd.f32 %v142_v48, %v141_v45  ;;  %v393_v53 = vpop.f32.mrf.mxu0  ;;  %v4578_v54 = vpop.f32.mrf.mxu1 }
  0xd8   :  { %v144_v55 = vrot.slane %v143_v52, 1  ;;  %v4588_v56 = vpop.f32.mrf.mxu0  ;;  %v251_v24 = vpop.f32.mrf.mxu1 }
  0xda   :  { %v145_v58 = vadd.f32 %v144_v55, %v143_v52  ;;  %v396_v41 = vpop.f32.mrf.mxu0 }
  0xdc   :  { %v147_v59 = vsub.f32 %v145_v58, %v146_v57 }
  0xde   :  { %v148_v60 = vadd.f32 1e-05, %v147_v59 }
  0xe0   :  { %5040 = vrsqrt.f32 %v148_v60 }
  0xed   :  { %v5041_v2 = vpop.eup %5040 }
  0xee   :  { %v151_v3 = vmul.f32 %v5041_v2, %v150_v63 }
  0xf0   :  { %v153_v5 = vmul.f32 %v151_v3, %v54_v51  ;;  %v5164_v6 = vrot.slane %v151_v3, %v5158_v1 }
  0xf2   :  { %v154_v7 = vsub.f32 %v152_v4, %v153_v5  ;;  %v268_v8 = vmul.f32 %v4573_v31, %v5164_v6  ;;  %v409_v9 = vmul.f32 %v4583_v33, %v5164_v6  ;;  %v266_v10 = vmul.f32 %v5164_v6, %v232_v34 }
  0xf3   :  { %v407_v11 = vmul.f32 %v377_v39, %v5164_v6  ;;  %v269_v13 = vmul.f32 %v4574_v40, %v5164_v6  ;;  %v410_v14 = vmul.f32 %v4584_v42, %v5164_v6  ;;  %v267_v15 = vmul.f32 %v5164_v6, %v235_v43 }
  0xf4   :  { %v5171_v12 = vrot.slane %v154_v7, %v5158_v1  ;;  %v408_v16 = vmul.f32 %v380_v46, %v5164_v6  ;;  %v272_v17 = vmul.f32 %v4577_v47, %v5164_v6  ;;  %v413_v18 = vmul.f32 %v4587_v49, %v5164_v6 }
  0xf5   :  { %v270_v19 = vmul.f32 %v5164_v6, %v248_v50  ;;  %v411_v32 = vmul.f32 %v393_v53, %v5164_v6  ;;  %v271_v36 = vmul.f32 %v5164_v6, %v251_v24  ;;  %v412_v52 = vmul.f32 %v396_v41, %v5164_v6  ;;  %v4964_v24 = vld [vmem:[%s5907_s0 + $0x88] sm:$0xff]   ;;  %v4979_v41 = vld [vmem:[%s5907_s0 + $0x100] sm:$0xff]  }
  0xf6   :  { %v279_v20 = vadd.f32 %v5171_v12, %v268_v8  ;;  %v416_v21 = vadd.f32 %v409_v9, %v5171_v12  ;;  %v277_v22 = vadd.f32 %v5171_v12, %v266_v10  ;;  %v414_v23 = vadd.f32 %v407_v11, %v5171_v12 }
  0xf7   :  { %v280_v25 = vadd.f32 %v5171_v12, %v269_v13  ;;  %v417_v26 = vadd.f32 %v410_v14, %v5171_v12  ;;  %v278_v27 = vadd.f32 %v5171_v12, %v267_v15  ;;  %v415_v28 = vadd.f32 %v408_v16, %v5171_v12  ;;  %v4955_v13 = vld [vmem:[%s5907_s0 + $0x40] sm:$0xff]   ;;  %v4956_v16 = vld [vmem:[%s5907_s0 + $0x48] sm:$0xff]  }
  0xf8   :  { %v286_v29 = vmul.f32 0.2, %v279_v20  ;;  %v423_v30 = vmul.f32 0.2, %v416_v21  ;;  %v284_v31 = vmul.f32 0.2, %v277_v22  ;;  %v283_v47 = vadd.f32 %v5171_v12, %v272_v17 }
  0xf9   :  { %v421_v33 = vmul.f32 0.2, %v414_v23  ;;  %v287_v34 = vmul.f32 0.2, %v280_v25  ;;  %v424_v35 = vmul.f32 0.2, %v417_v26  ;;  %v420_v48 = vadd.f32 %v413_v18, %v5171_v12 }
  0xfa   :  { %v293_v37 = vmax.f32 %v279_v20, %v286_v29  ;;  %v430_v38 = vmax.f32 %v416_v21, %v423_v30  ;;  %v291_v39 = vmax.f32 %v277_v22, %v284_v31  ;;  %v285_v40 = vmul.f32 0.2, %v278_v27  ;;  %v4957_v17 = vld [vmem:[%s5907_s0 + $0x50] sm:$0xff]   ;;  %v4958_v18 = vld [vmem:[%s5907_s0 + $0x58] ss:$0 sps:$4 sm:$0x11]  }
  0xfb   :  { %v428_v42 = vmax.f32 %v414_v23, %v421_v33  ;;  %v294_v43 = vmax.f32 %v280_v25, %v287_v34  ;;  %v431_v44 = vmax.f32 %v417_v26, %v424_v35  ;;  %v422_v45 = vmul.f32 0.2, %v415_v28  ;;  %v4960_v20 = vld [vmem:[%s5907_s0 + $0x68] sm:$0xff]   ;;  %v4961_v21 = vld [vmem:[%s5907_s0 + $0x70] sm:$0xff]   ;;  %v4963_v23 = vld [vmem:[%s5907_s0 + $0x80] sm:$0xff]  }
  0xfc   :  { %v292_v46 = vmax.f32 %v278_v27, %v285_v40  ;;  %v281_v49 = vadd.f32 %v5171_v12, %v270_v19  ;;  %v418_v51 = vadd.f32 %v411_v32, %v5171_v12  ;;  %v282_v56 = vadd.f32 %v5171_v12, %v271_v36  ;;  %v4959_v19 = vld [vmem:[%s5907_s0 + $0x60] sm:$0xff]   ;;  %v4962_v22 = vld [vmem:[%s5907_s0 + $0x78] ss:$0 sps:$4 sm:$0x11]   ;;  %v4965_v25 = vld [vmem:[%s5907_s0 + $0x90] sm:$0xff]  }
  0xfd   :  { %v429_v50 = vmax.f32 %v415_v28, %v422_v45  ;;  %v299_v53 = vpack.c.bf16 %v294_v43, %v293_v37  ;;  %v436_v54 = vpack.c.bf16 %v431_v44, %v430_v38  ;;  %v419_v58 = vadd.f32 %v412_v52, %v5171_v12  ;;  %v4966_v26 = vld [vmem:[%s5907_s0 + $0x98] ss:$0 sps:$4 sm:$0x11]   ;;  %v4967_v27 = vld [vmem:[%s5907_s0 + $0xa0] sm:$0xff]   ;;  %v4968_v28 = vld [vmem:[%s5907_s0 + $0xa8] sm:$0xff]  }
  0xfe   :  { %v288_v55 = vmul.f32 0.2, %v281_v49  ;;  %v425_v57 = vmul.f32 0.2, %v418_v51  ;;  %v298_v60 = vpack.c.bf16 %v292_v46, %v291_v39  ;;  %v290_v61 = vmul.f32 0.2, %v283_v47 }
  0xff   :  { %v435_v59 = vpack.c.bf16 %v429_v50, %v428_v42  ;;  %v427_v62 = vmul.f32 0.2, %v420_v48  ;;  %v289_v2 = vmul.f32 0.2, %v282_v56  ;;  %v426_v4 = vmul.f32 0.2, %v419_v58 }
 0x100   :  { %v295_v63 = vmax.f32 %v281_v49, %v288_v55  ;;  %v432_v3 = vmax.f32 %v418_v51, %v425_v57  ;;  %4605 = vmatprep.mubr.msk.bf16.mxu0 %vm45_vm1, %v298_v60  ;;  %v297_v8 = vmax.f32 %v283_v47, %v290_v61  ;;  %v4969_v29 = vld [vmem:[%s5907_s0 + $0xb0] sm:$0xff]   ;;  %v4970_v30 = vld [vmem:[%s5907_s0 + $0xb8] ss:$0 sps:$4 sm:$0x11]   ;;  %v4971_v31 = vld [vmem:[%s5907_s0 + $0xc0] sm:$0xff]  }
 0x101   :  { %4593 = vmatprep.mubr.msk.bf16.mxu1 %vm45_vm1, %v435_v59  ;;  %v296_v5 = vmax.f32 %v282_v56, %v289_v2  ;;  %4606 = vmatmul.mubr.msk.bf16.vlgmr.msra.gmra.mxu0 %vm45_vm1, %v299_v53  ;;  %v433_v7 = vmax.f32 %v419_v58, %v426_v4  ;;  %v434_v9 = vmax.f32 %v420_v48, %v427_v62  ;;  %v4972_v32 = vld [vmem:[%s5907_s0 + $0xc8] sm:$0xff]   ;;  %v4973_v33 = vld [vmem:[%s5907_s0 + $0xd0] sm:$0xff]   ;;  %v4974_v34 = vld [vmem:[%s5907_s0 + $0xd8] ss:$0 sps:$4 sm:$0x11]  }
 0x102   :  { %4594 = vmatmul.mubr.msk.bf16.vlgmr.msra.gmra.mxu1 %vm45_vm1, %v436_v54  ;;  %v301_v14 = vpack.c.bf16 %v297_v8, %v297_v8  ;;  %v4975_v35 = vld [vmem:[%s5907_s0 + $0xe0] sm:$0xff]   ;;  %v4976_v36 = vld [vmem:[%s5907_s0 + $0xe8] sm:$0xff]   ;;  %v4977_v37 = vld [vmem:[%s5907_s0 + $0xf0] sm:$0xff]  }
 0x103   :  { %4614 = vmatpush3.bf16.msra.mxu1 %v5090_v0  ;;  %v300_v10 = vpack.c.bf16 %v296_v5, %v295_v63  ;;  %v437_v11 = vpack.c.bf16 %v433_v7, %v432_v3  ;;  %v438_v15 = vpack.c.bf16 %v434_v9, %v434_v9  ;;  %v5005_v38 = vld [vmem:[%s5908_s2 + $0x28] sm:$0xff]   ;;  %v5008_v39 = vld [vmem:[%s5908_s2 + $0x20] sm:$0xff]   ;;  %v4978_v40 = vld [vmem:[%s5907_s0 + $0xf8] ss:$0 sps:$4 sm:$0x11]  }
 0x104   :  { %4635 = vmatprep.subr.bf16.mxu1 %v5090_v0  ;;  %4623 = vmatprep.subr.bf16.mxu0 %v5005_v38  ;;  %v4980_v42 = vld [vmem:[%s5907_s0 + $0x108] sm:$0xff]   ;;  %v4981_v43 = vld [vmem:[%s5907_s0 + $0x110] sm:$0xff]   ;;  %v5334_v44 = vld [vmem:[%s5908_s2 + $0x38] sm:$0xff]  }
 0x105   :  { %4609 = vmatprep.mubr.msk.bf16.mxu0 %vm45_vm1, %v300_v10  ;;  %4597 = vmatprep.mubr.msk.bf16.mxu1 %vm45_vm1, %v437_v11  ;;  %v4982_v45 = vld [vmem:[%s5907_s0 + $0x118] ss:$0 sps:$4 sm:$0x11]   ;;  %v4983_v46 = vld [vmem:[%s5907_s0 + $0x120] sm:$0xff]   ;;  %v4984_v47 = vld [vmem:[%s5907_s0 + $0x128] sm:$0xff]  }
 0x106   :  { %4624 = vmatpush3.bf16.msra.mxu0 %v5005_v38  ;;  %v4985_v48 = vld [vmem:[%s5907_s0 + $0x130] sm:$0xff]   ;;  %v4986_v49 = vld [vmem:[%s5907_s0 + $0x138] ss:$0 sps:$4 sm:$0x11]   ;;  %v4987_v50 = vld [vmem:[%s5907_s0 + $0x140] sm:$0xff]  }
 0x107   :  { %4625 = vmatprep.subr.bf16.mxu0 %v5008_v39  ;;  %v4988_v51 = vld [vmem:[%s5907_s0 + $0x148] sm:$0xff]   ;;  %v4989_v52 = vld [vmem:[%s5907_s0 + $0x150] sm:$0xff]   ;;  %v4990_v53 = vld [vmem:[%s5907_s0 + $0x158] ss:$0 sps:$4 sm:$0x11]  }
 0x108   :  { %v4991_v54 = vld [vmem:[%s5907_s0 + $0x160] sm:$0xff]   ;;  %v4992_v55 = vld [vmem:[%s5907_s0 + $0x168] sm:$0xff]   ;;  %v4993_v56 = vld [vmem:[%s5907_s0 + $0x170] sm:$0xff]  }
 0x109   :  { %4610 = vmatmul.mubr.msk.bf16.gmra.mxu0 %vm45_vm1, %v301_v14  ;;  %v4994_v57 = vld [vmem:[%s5907_s0 + $0x178] ss:$0 sps:$4 sm:$0x11]   ;;  %v4995_v58 = vld [vmem:[%s5907_s0 + $0x180] sm:$0xff]   ;;  %v4996_v59 = vld [vmem:[%s5907_s0 + $0x188] sm:$0xff]  }
 0x10a   :  { %4598 = vmatmul.mubr.msk.bf16.gmra.mxu1 %vm45_vm1, %v438_v15  ;;  %4626 = vmatpush3.bf16.msra.mxu0 %v5008_v39  ;;  %v4997_v60 = vld [vmem:[%s5907_s0 + $0x190] sm:$0xff]   ;;  %v4998_v61 = vld [vmem:[%s5907_s0 + $0x198] ss:$0 sps:$4 sm:$0x11]   ;;  %v4999_v62 = vld [vmem:[%s5907_s0 + $0x1a0] sm:$0xff]  }
 0x10b   :  { %4615 = vmatprep.mubr.msk.bf16.mxu1 %vm55_vm0, %v4955_v13  ;;  %4645 = vmatprep.subr.bf16.mxu0 %v5334_v44  ;;  %v5000_v63 = vld [vmem:[%s5907_s0 + $0x1a8] sm:$0xff]   ;;  %v5001_v2 = vld [vmem:[%s5907_s0 + $0x1b0] sm:$0xff]   ;;  %v5002_v13 = vld [vmem:[%s5907_s0 + $0x1b8] ss:$0 sps:$4 sm:$0x11]  }
 0x10c   :  { %v5003_v15 = vld [vmem:[%s5907_s0 + $0x1c0] sm:$0xff]  }
 0x112   :  { %4616 = vmatmul.mubr.msk.bf16.vlgmr.msra.gmra.mxu1 %vm55_vm0, %v4956_v16 }
 0x113   :  { %4636 = vmatpush3.bf16.msra.mxu1 %v5090_v0  ;;  %4619 = vmatprep.mubr.msk.bf16.mxu1 %vm55_vm0, %v4957_v17 }
 0x114   :  { %4657 = vmatprep.subr.bf16.mxu1 %v5090_v0 }
 0x11a   :  { %4620 = vmatmul.mubr.msk.bf16.gmra.mxu1 %vm55_vm0, %v4958_v18 }
 0x11b   :  { %4637 = vmatprep.mubr.msk.bf16.mxu1 %vm55_vm0, %v4959_v19 }
 0x122   :  { %4638 = vmatmul.mubr.msk.bf16.vlgmr.msra.gmra.mxu1 %vm55_vm0, %v4960_v20 }
 0x123   :  { %4658 = vmatpush3.bf16.msra.mxu1 %v5090_v0  ;;  %4641 = vmatprep.mubr.msk.bf16.mxu1 %vm55_vm0, %v4961_v21 }
 0x124   :  { %4679 = vmatprep.subr.bf16.mxu1 %v5090_v0 }
 0x12a   :  { %4642 = vmatmul.mubr.msk.bf16.gmra.mxu1 %vm55_vm0, %v4962_v22 }
 0x12b   :  { %4659 = vmatprep.mubr.msk.bf16.mxu1 %vm55_vm0, %v4963_v23 }
 0x132   :  { %4660 = vmatmul.mubr.msk.bf16.vlgmr.msra.gmra.mxu1 %vm55_vm0, %v4964_v24 }
 0x133   :  { %4680 = vmatpush3.bf16.msra.mxu1 %v5090_v0  ;;  %4663 = vmatprep.mubr.msk.bf16.mxu1 %vm55_vm0, %v4965_v25 }
 0x134   :  { %4701 = vmatprep.subr.bf16.mxu1 %v5090_v0 }
 0x13a   :  { %4664 = vmatmul.mubr.msk.bf16.gmra.mxu1 %vm55_vm0, %v4966_v26  ;;  %v5004_v26 = vld [vmem:[%s5907_s0 + $0x1c8] sm:$0xff]  }
 0x13b   :  { %4681 = vmatprep.mubr.msk.bf16.mxu1 %vm55_vm0, %v4967_v27  ;;  %v5006_v27 = vld [vmem:[%s5907_s0 + $0x1d0] sm:$0xff]  }
 0x142   :  { %4682 = vmatmul.mubr.msk.bf16.vlgmr.msra.gmra.mxu1 %vm55_vm0, %v4968_v28 }
 0x143   :  { %4702 = vmatpush3.bf16.msra.mxu1 %v5090_v0  ;;  %4685 = vmatprep.mubr.msk.bf16.mxu1 %vm55_vm0, %v4969_v29 }
 0x144   :  { %4723 = vmatprep.subr.bf16.mxu1 %v5090_v0 }
 0x14a   :  { %4686 = vmatmul.mubr.msk.bf16.gmra.mxu1 %vm55_vm0, %v4970_v30 }
 0x14b   :  { %4703 = vmatprep.mubr.msk.bf16.mxu1 %vm55_vm0, %v4971_v31 }
 0x152   :  { %4704 = vmatmul.mubr.msk.bf16.vlgmr.msra.gmra.mxu1 %vm55_vm0, %v4972_v32 }
 0x153   :  { %4724 = vmatpush3.bf16.msra.mxu1 %v5090_v0  ;;  %4707 = vmatprep.mubr.msk.bf16.mxu1 %vm55_vm0, %v4973_v33 }
 0x154   :  { %4745 = vmatprep.subr.bf16.mxu1 %v5090_v0 }
 0x15a   :  { %4708 = vmatmul.mubr.msk.bf16.gmra.mxu1 %vm55_vm0, %v4974_v34  ;;  %v5007_v34 = vld [vmem:[%s5907_s0 + $0x1d8] ss:$0 sps:$4 sm:$0x11]  }
 0x15b   :  { %4725 = vmatprep.mubr.msk.bf16.mxu1 %vm55_vm0, %v4975_v35 }
 0x162   :  { %4726 = vmatmul.mubr.msk.bf16.vlgmr.msra.gmra.mxu1 %vm55_vm0, %v4976_v36 }
 0x163   :  { %4746 = vmatpush3.bf16.msra.mxu1 %v5090_v0  ;;  %4729 = vmatprep.mubr.msk.bf16.mxu1 %vm55_vm0, %v4977_v37 }
 0x164   :  { %4767 = vmatprep.subr.bf16.mxu1 %v5090_v0 }
 0x16a   :  { %4730 = vmatmul.mubr.msk.bf16.gmra.mxu1 %vm55_vm0, %v4978_v40 }
 0x16b   :  { %4747 = vmatprep.mubr.msk.bf16.mxu1 %vm55_vm0, %v4979_v41 }
 0x172   :  { %4748 = vmatmul.mubr.msk.bf16.vlgmr.msra.gmra.mxu1 %vm55_vm0, %v4980_v42 }
 0x173   :  { %4768 = vmatpush3.bf16.msra.mxu1 %v5090_v0  ;;  %4751 = vmatprep.mubr.msk.bf16.mxu1 %vm55_vm0, %v4981_v43 }
 0x174   :  { %4789 = vmatprep.subr.bf16.mxu1 %v5090_v0 }
 0x17a   :  { %4752 = vmatmul.mubr.msk.bf16.gmra.mxu1 %vm55_vm0, %v4982_v45 }
 0x17b   :  { %4769 = vmatprep.mubr.msk.bf16.mxu1 %vm55_vm0, %v4983_v46 }
 0x182   :  { %4770 = vmatmul.mubr.msk.bf16.vlgmr.msra.gmra.mxu1 %vm55_vm0, %v4984_v47 }
 0x183   :  { %4790 = vmatpush3.bf16.msra.mxu1 %v5090_v0  ;;  %4773 = vmatprep.mubr.msk.bf16.mxu1 %vm55_vm0, %v4985_v48 }
 0x184   :  { %4811 = vmatprep.subr.bf16.mxu1 %v5090_v0 }
 0x18a   :  { %4774 = vmatmul.mubr.msk.bf16.gmra.mxu1 %vm55_vm0, %v4986_v49 }
 0x18b   :  { %4791 = vmatprep.mubr.msk.bf16.mxu1 %vm55_vm0, %v4987_v50 }
 0x192   :  { %4792 = vmatmul.mubr.msk.bf16.vlgmr.msra.gmra.mxu1 %vm55_vm0, %v4988_v51 }
 0x193   :  { %4812 = vmatpush3.bf16.msra.mxu1 %v5090_v0  ;;  %4795 = vmatprep.mubr.msk.bf16.mxu1 %vm55_vm0, %v4989_v52 }
 0x194   :  { %4833 = vmatprep.subr.bf16.mxu1 %v5090_v0 }
 0x19a   :  { %4796 = vmatmul.mubr.msk.bf16.gmra.mxu1 %vm55_vm0, %v4990_v53 }
 0x19b   :  { %4813 = vmatprep.mubr.msk.bf16.mxu1 %vm55_vm0, %v4991_v54  ;;  %v5010_v54 = vld [vmem:[%s5907_s0 + $0x1e8] sm:$0xff]  }
 0x1a2   :  { %4814 = vmatmul.mubr.msk.bf16.vlgmr.msra.gmra.mxu1 %vm55_vm0, %v4992_v55 }
 0x1a3   :  { %4834 = vmatpush3.bf16.msra.mxu1 %v5090_v0  ;;  %4817 = vmatprep.mubr.msk.bf16.mxu1 %vm55_vm0, %v4993_v56 }
 0x1a4   :  { %4855 = vmatprep.subr.bf16.mxu1 %v5090_v0 }
 0x1aa   :  { %4818 = vmatmul.mubr.msk.bf16.gmra.mxu1 %vm55_vm0, %v4994_v57 }
 0x1ab   :  { %4835 = vmatprep.mubr.msk.bf16.mxu1 %vm55_vm0, %v4995_v58 }
 0x1b2   :  { %4836 = vmatmul.mubr.msk.bf16.vlgmr.msra.gmra.mxu1 %vm55_vm0, %v4996_v59 }
 0x1b3   :  { %4856 = vmatpush3.bf16.msra.mxu1 %v5090_v0  ;;  %4839 = vmatprep.mubr.msk.bf16.mxu1 %vm55_vm0, %v4997_v60  ;;  %v5012_v60 = vld [vmem:[%s5907_s0 + $0x1f0] sm:$0xff]  }
 0x1b4   :  { %4877 = vmatprep.subr.bf16.mxu1 %v5090_v0 }
 0x1ba   :  { %4840 = vmatmul.mubr.msk.bf16.gmra.mxu1 %vm55_vm0, %v4998_v61 }
 0x1bb   :  { %4857 = vmatprep.mubr.msk.bf16.mxu1 %vm55_vm0, %v4999_v62 }
 0x1c1   :  { %v4607_v4 = vpop.f32.mrf.mxu0 }
 0x1c2   :  { %v4595_v3 = vpop.f32.mrf.mxu1  ;;  %4858 = vmatmul.mubr.msk.bf16.vlgmr.msra.gmra.mxu1 %vm55_vm0, %v5000_v63 }
 0x1c3   :  { %v5428_v5 = vadd.f32 %v4607_v4, %v4595_v3  ;;  %4878 = vmatpush3.bf16.msra.mxu1 %v5090_v0  ;;  %4861 = vmatprep.mubr.msk.bf16.mxu1 %vm55_vm0, %v5001_v2  ;;  %v590_v8 = vpop.f32.mrf.mxu0  ;;  %v5014_v4 = vld [vmem:[%s5908_s2 + $0x30] sm:$0xff]  }
 0x1c4   :  { %v502_v7 = vpop.f32.mrf.mxu1  ;;  %4899 = vmatprep.subr.bf16.mxu1 %v5090_v0 }
 0x1c5   :  { %v5433_v9 = vadd.f32 %v590_v8, %v502_v7  ;;  %v4608_v11 = vpop.f32.mrf.mxu0 }
 0x1c6   :  { %v4596_v10 = vpop.f32.mrf.mxu1 }
 0x1c7   :  { %v5438_v14 = vadd.f32 %v4608_v11, %v4596_v10  ;;  %v5445_v17 = vpop.f32.mrf.mxu0 }
 0x1c8   :  { %v5443_v16 = vpop.f32.mrf.mxu1 }
 0x1c9   :  { %v4611_v19 = vpop.f32.mrf.mxu0 }
 0x1ca   :  { %v4599_v18 = vpop.f32.mrf.mxu1  ;;  %4862 = vmatmul.mubr.msk.bf16.gmra.mxu1 %vm55_vm0, %v5002_v13 }
 0x1cb   :  { %v5448_v20 = vadd.f32 %v4611_v19, %v4599_v18  ;;  %4879 = vmatprep.mubr.msk.bf16.mxu1 %vm55_vm0, %v5003_v15  ;;  %v606_v22 = vpop.f32.mrf.mxu0 }
 0x1cc   :  { %v518_v21 = vpop.f32.mrf.mxu1 }
 0x1cd   :  { %v5451_v23 = vadd.f32 %v606_v22, %v518_v21  ;;  %v4612_v25 = vpop.f32.mrf.mxu0  ;;  %v5013_v21 = vld [vmem:[%s5907_s0 + $0x1f8] ss:$0 sps:$4 sm:$0x11]   ;;  %v5015_v22 = vld [vmem:[%s5908_s2 + $0x48] sm:$0xff]  }
 0x1ce   :  { %v4600_v24 = vpop.f32.mrf.mxu1 }
 0x1d0   :  { %v5459_v28 = vpop.f32.mrf.mxu1 }
 0x1d2   :  { %v4617_v29 = vpop.f32.mrf.mxu1  ;;  %4880 = vmatmul.mubr.msk.bf16.vlgmr.msra.gmra.mxu1 %vm55_vm0, %v5004_v26 }
 0x1d3   :  { %4900 = vmatpush3.bf16.msra.mxu1 %v5090_v0  ;;  %4883 = vmatprep.mubr.msk.bf16.mxu1 %vm55_vm0, %v5006_v27  ;;  %v723_v30 = vmul.f32 %v4617_v29, %v5164_v6  ;;  %v5009_v0 = vld [vmem:[%s5907_s0 + $0x1e0] sm:$0xff]  }
 0x1d4   :  { %v691_v31 = vpop.f32.mrf.mxu1 }
 0x1d5   :  { %v721_v32 = vmul.f32 %v691_v31, %v5164_v6  ;;  %v730_v37 = vadd.f32 %v723_v30, %v5171_v12 }
 0x1d6   :  { %v4618_v33 = vpop.f32.mrf.mxu1 }
 0x1d7   :  { %v728_v35 = vadd.f32 %v721_v32, %v5171_v12  ;;  %v724_v36 = vmul.f32 %v4618_v33, %v5164_v6  ;;  %v737_v47 = vmul.f32 0.2, %v730_v37 }
 0x1d8   :  { %v694_v38 = vpop.f32.mrf.mxu1 }
 0x1d9   :  { %v731_v39 = vadd.f32 %v724_v36, %v5171_v12  ;;  %v722_v40 = vmul.f32 %v694_v38, %v5164_v6  ;;  %v735_v42 = vmul.f32 0.2, %v728_v35  ;;  %v744_v58 = vmax.f32 %v730_v37, %v737_v47 }
 0x1da   :  { %v4621_v41 = vpop.f32.mrf.mxu1  ;;  %4884 = vmatmul.mubr.msk.bf16.gmra.mxu1 %vm55_vm0, %v5007_v34 }
 0x1db   :  { %v738_v43 = vmul.f32 0.2, %v731_v39  ;;  %v729_v45 = vadd.f32 %v722_v40, %v5171_v12  ;;  %v727_v46 = vmul.f32 %v4621_v41, %v5164_v6  ;;  %4901 = vmatprep.mubr.msk.bf16.mxu1 %vm55_vm0, %v5009_v0  ;;  %v742_v55 = vmax.f32 %v728_v35, %v735_v42 }
 0x1dc   :  { %v707_v48 = vpop.f32.mrf.mxu1 }
 0x1dd   :  { %v736_v49 = vmul.f32 0.2, %v729_v45  ;;  %v725_v50 = vmul.f32 %v707_v48, %v5164_v6  ;;  %v745_v51 = vmax.f32 %v731_v39, %v738_v43  ;;  %v734_v52 = vadd.f32 %v727_v46, %v5171_v12 }
 0x1de   :  { %v4622_v53 = vpop.f32.mrf.mxu1 }
 0x1df   :  { %v743_v56 = vmax.f32 %v729_v45, %v736_v49  ;;  %v732_v57 = vadd.f32 %v725_v50, %v5171_v12  ;;  %v750_v63 = vpack.c.bf16 %v745_v51, %v744_v58  ;;  %v741_v2 = vmul.f32 0.2, %v734_v52  ;;  %v5016_v58 = vld [vmem:[%s5908_s2 + $0x40] sm:$0xff]  }
 0x1e0   :  { %v710_v59 = vpop.f32.mrf.mxu1 }
 0x1e1   :  { %v749_v61 = vpack.c.bf16 %v743_v56, %v742_v55  ;;  %v726_v62 = vmul.f32 %v710_v59, %v5164_v6  ;;  %v739_v7 = vmul.f32 0.2, %v732_v57  ;;  %v748_v18 = vmax.f32 %v734_v52, %v741_v2 }
 0x1e2   :  { %v4639_v3 = vpop.f32.mrf.mxu1  ;;  %4902 = vmatmul.mubr.msk.bf16.vlgmr.msra.gmra.mxu1 %vm55_vm0, %v5010_v54 }
 0x1e3   :  { %v733_v8 = vadd.f32 %v726_v62, %v5171_v12  ;;  %4627 = vmatprep.mubr.msk.bf16.mxu0 %vm45_vm1, %v749_v61  ;;  %4905 = vmatprep.mubr.msk.bf16.mxu1 %vm55_vm0, %v5012_v60  ;;  %v956_v13 = vmul.f32 %v4639_v3, %v5164_v6  ;;  %v746_v24 = vmax.f32 %v732_v57, %v739_v7 }
 0x1e4   :  { %4628 = vmatmul.mubr.msk.bf16.vlgmr.msra.gmra.mxu0 %vm45_vm1, %v750_v63  ;;  %v924_v10 = vpop.f32.mrf.mxu1  ;;  %v752_v32 = vpack.c.bf16 %v748_v18, %v748_v18 }
 0x1e5   :  { %v740_v11 = vmul.f32 0.2, %v733_v8  ;;  %v954_v15 = vmul.f32 %v924_v10, %v5164_v6  ;;  %4646 = vmatpush3.bf16.msra.mxu0 %v5334_v44  ;;  %v963_v44 = vadd.f32 %v956_v13, %v5171_v12 }
 0x1e6   :  { %v4640_v19 = vpop.f32.mrf.mxu1  ;;  %4647 = vmatprep.subr.bf16.mxu0 %v5014_v4 }
 0x1e7   :  { %v747_v25 = vmax.f32 %v733_v8, %v740_v11  ;;  %v957_v26 = vmul.f32 %v4640_v19, %v5164_v6  ;;  %v961_v27 = vadd.f32 %v954_v15, %v5171_v12  ;;  %v970_v39 = vmul.f32 0.2, %v963_v44  ;;  %v5017_v8 = vld [vmem:[%s5908_s2 + $0x58] sm:$0xff]  }
 0x1e8   :  { %v927_v29 = vpop.f32.mrf.mxu1 }
 0x1e9   :  { %v751_v30 = vpack.c.bf16 %v747_v25, %v746_v24  ;;  %v964_v31 = vadd.f32 %v957_v26, %v5171_v12  ;;  %4648 = vmatpush3.bf16.msra.mxu0 %v5014_v4  ;;  %v955_v33 = vmul.f32 %v927_v29, %v5164_v6  ;;  %v968_v0 = vmul.f32 0.2, %v961_v27 }
 0x1ea   :  { %v4643_v34 = vpop.f32.mrf.mxu1  ;;  %4906 = vmatmul.mubr.msk.bf16.gmra.mxu1 %vm55_vm0, %v5013_v21  ;;  %4667 = vmatprep.subr.bf16.mxu0 %v5015_v22  ;;  %v977_v50 = vmax.f32 %v963_v44, %v970_v39 }
 0x1eb   :  { %v971_v35 = vmul.f32 0.2, %v964_v31  ;;  %v960_v36 = vmul.f32 %v4643_v34, %v5164_v6  ;;  %4631 = vmatprep.mubr.msk.bf16.mxu0 %vm45_vm1, %v751_v30  ;;  %v962_v37 = vadd.f32 %v955_v33, %v5171_v12  ;;  %v975_v47 = vmax.f32 %v961_v27, %v968_v0 }
 0x1ec   :  { %4632 = vmatmul.mubr.msk.bf16.gmra.mxu0 %vm45_vm1, %v752_v32  ;;  %v940_v38 = vpop.f32.mrf.mxu1 }
 0x1ed   :  { %v958_v40 = vmul.f32 %v940_v38, %v5164_v6  ;;  %v969_v41 = vmul.f32 0.2, %v962_v37  ;;  %v978_v43 = vmax.f32 %v964_v31, %v971_v35  ;;  %v967_v45 = vadd.f32 %v960_v36, %v5171_v12 }
 0x1ee   :  { %v4644_v42 = vpop.f32.mrf.mxu1 }
 0x1ef   :  { %v965_v46 = vadd.f32 %v958_v40, %v5171_v12  ;;  %v976_v48 = vmax.f32 %v962_v37, %v969_v41  ;;  %v983_v54 = vpack.c.bf16 %v978_v43, %v977_v50  ;;  %v974_v55 = vmul.f32 0.2, %v967_v45 }
 0x1f0   :  { %v943_v49 = vpop.f32.mrf.mxu1 }
 0x1f1   :  { %v959_v51 = vmul.f32 %v943_v49, %v5164_v6  ;;  %v982_v52 = vpack.c.bf16 %v976_v48, %v975_v47  ;;  %v972_v56 = vmul.f32 0.2, %v965_v46  ;;  %v981_v2 = vmax.f32 %v967_v45, %v974_v55  ;;  %v5018_v47 = vld [vmem:[%s5908_s2 + $0x50] sm:$0xff]  }
 0x1f2   :  { %v4661_v53 = vpop.f32.mrf.mxu1 }
 0x1f3   :  { %v966_v57 = vadd.f32 %v959_v51, %v5171_v12  ;;  %4649 = vmatprep.mubr.msk.bf16.mxu0 %vm45_vm1, %v982_v52  ;;  %v1189_v61 = vmul.f32 %v4661_v53, %v5164_v6  ;;  %v979_v3 = vmax.f32 %v965_v46, %v972_v56 }
 0x1f4   :  { %v1157_v59 = vpop.f32.mrf.mxu1  ;;  %4650 = vmatmul.mubr.msk.bf16.vlgmr.msra.gmra.mxu0 %vm45_vm1, %v983_v54 }
 0x1f5   :  { %v973_v60 = vmul.f32 0.2, %v966_v57  ;;  %v1187_v62 = vmul.f32 %v1157_v59, %v5164_v6  ;;  %4668 = vmatpush3.bf16.msra.mxu0 %v5015_v22  ;;  %v1196_v15 = vadd.f32 %v1189_v61, %v5171_v12  ;;  %v985_v22 = vpack.c.bf16 %v981_v2, %v981_v2 }
 0x1f6   :  { %v4662_v63 = vpop.f32.mrf.mxu1  ;;  %4669 = vmatprep.subr.bf16.mxu0 %v5016_v58 }
 0x1f7   :  { %v980_v4 = vmax.f32 %v966_v57, %v973_v60  ;;  %v1190_v7 = vmul.f32 %v4662_v63, %v5164_v6  ;;  %v1194_v10 = vadd.f32 %v1187_v62, %v5171_v12  ;;  %v1203_v30 = vmul.f32 0.2, %v1196_v15  ;;  %v5019_v57 = vld [vmem:[%s5908_s2 + $0x68] sm:$0xff]  }
 0x1f8   :  { %v1160_v11 = vpop.f32.mrf.mxu1 }
 0x1f9   :  { %v984_v13 = vpack.c.bf16 %v980_v4, %v979_v3  ;;  %v1197_v18 = vadd.f32 %v1190_v7, %v5171_v12  ;;  %v1188_v19 = vmul.f32 %v1160_v11, %v5164_v6  ;;  %4670 = vmatpush3.bf16.msra.mxu0 %v5016_v58  ;;  %v1201_v26 = vmul.f32 0.2, %v1194_v10 }
 0x1fa   :  { %v4665_v21 = vpop.f32.mrf.mxu1  ;;  %4689 = vmatprep.subr.bf16.mxu0 %v5017_v8  ;;  %v1210_v38 = vmax.f32 %v1196_v15, %v1203_v30 }
 0x1fb   :  { %v1204_v24 = vmul.f32 0.2, %v1197_v18  ;;  %v1193_v25 = vmul.f32 %v4665_v21, %v5164_v6  ;;  %4653 = vmatprep.mubr.msk.bf16.mxu0 %vm45_vm1, %v984_v13  ;;  %v1195_v27 = vadd.f32 %v1188_v19, %v5171_v12  ;;  %v1208_v36 = vmax.f32 %v1194_v10, %v1201_v26 }
 0x1fc   :  { %v1173_v29 = vpop.f32.mrf.mxu1  ;;  %4654 = vmatmul.mubr.msk.bf16.gmra.mxu0 %vm45_vm1, %v985_v22 }
 0x1fd   :  { %v1191_v44 = vmul.f32 %v1173_v29, %v5164_v6  ;;  %v1202_v31 = vmul.f32 0.2, %v1195_v27  ;;  %v1211_v33 = vmax.f32 %v1197_v18, %v1204_v24  ;;  %v1200_v34 = vadd.f32 %v1193_v25, %v5171_v12 }
 0x1fe   :  { %v4666_v32 = vpop.f32.mrf.mxu1 }
 0x1ff   :  { %v1198_v35 = vadd.f32 %v1191_v44, %v5171_v12  ;;  %v1209_v0 = vmax.f32 %v1195_v27, %v1202_v31  ;;  %v1216_v42 = vpack.c.bf16 %v1211_v33, %v1210_v38  ;;  %v1207_v43 = vmul.f32 0.2, %v1200_v34 }
 0x200   :  { %v1176_v37 = vpop.f32.mrf.mxu1 }
 0x201   :  { %v1192_v39 = vmul.f32 %v1176_v37, %v5164_v6  ;;  %v1215_v40 = vpack.c.bf16 %v1209_v0, %v1208_v36  ;;  %v1205_v45 = vmul.f32 0.2, %v1198_v35  ;;  %v1214_v53 = vmax.f32 %v1200_v34, %v1207_v43  ;;  %v5020_v36 = vld [vmem:[%s5908_s2 + $0x60] sm:$0xff]  }
 0x202   :  { %v4683_v41 = vpop.f32.mrf.mxu1 }
 0x203   :  { %v1199_v46 = vadd.f32 %v1192_v39, %v5171_v12  ;;  %4671 = vmatprep.mubr.msk.bf16.mxu0 %vm45_vm1, %v1215_v40  ;;  %v1422_v50 = vmul.f32 %v4683_v41, %v5164_v6  ;;  %v1212_v54 = vmax.f32 %v1198_v35, %v1205_v45  ;;  %v1218_v3 = vpack.c.bf16 %v1214_v53, %v1214_v53 }
 0x204   :  { %v1390_v48 = vpop.f32.mrf.mxu1  ;;  %4672 = vmatmul.mubr.msk.bf16.vlgmr.msra.gmra.mxu0 %vm45_vm1, %v1216_v42 }
 0x205   :  { %v1206_v49 = vmul.f32 0.2, %v1199_v46  ;;  %v1420_v51 = vmul.f32 %v1390_v48, %v5164_v6  ;;  %4690 = vmatpush3.bf16.msra.mxu0 %v5017_v8  ;;  %v1429_v61 = vadd.f32 %v1422_v50, %v5171_v12 }
 0x206   :  { %v4684_v52 = vpop.f32.mrf.mxu1  ;;  %4691 = vmatprep.subr.bf16.mxu0 %v5018_v47 }
 0x207   :  { %v1213_v55 = vmax.f32 %v1199_v46, %v1206_v49  ;;  %v1423_v56 = vmul.f32 %v4684_v52, %v5164_v6  ;;  %v1427_v58 = vadd.f32 %v1420_v51, %v5171_v12  ;;  %v1436_v13 = vmul.f32 0.2, %v1429_v61  ;;  %v5021_v46 = vld [vmem:[%s5908_s2 + $0x78] sm:$0xff]  }
 0x208   :  { %v1393_v59 = vpop.f32.mrf.mxu1 }
 0x209   :  { %v1217_v60 = vpack.c.bf16 %v1213_v55, %v1212_v54  ;;  %v1430_v62 = vadd.f32 %v1423_v56, %v5171_v12  ;;  %v1421_v63 = vmul.f32 %v1393_v59, %v5164_v6  ;;  %4692 = vmatpush3.bf16.msra.mxu0 %v5018_v47  ;;  %v1434_v8 = vmul.f32 0.2, %v1427_v58 }
 0x20a   :  { %v4687_v2 = vpop.f32.mrf.mxu1  ;;  %4711 = vmatprep.subr.bf16.mxu0 %v5019_v57  ;;  %v1443_v29 = vmax.f32 %v1429_v61, %v1436_v13 }
 0x20b   :  { %v1437_v4 = vmul.f32 0.2, %v1430_v62  ;;  %v1426_v7 = vmul.f32 %v4687_v2, %v5164_v6  ;;  %4675 = vmatprep.mubr.msk.bf16.mxu0 %vm45_vm1, %v1217_v60  ;;  %v1428_v10 = vadd.f32 %v1421_v63, %v5171_v12  ;;  %v1441_v25 = vmax.f32 %v1427_v58, %v1434_v8 }
 0x20c   :  { %v1406_v11 = vpop.f32.mrf.mxu1  ;;  %4676 = vmatmul.mubr.msk.bf16.gmra.mxu0 %vm45_vm1, %v1218_v3 }
 0x20d   :  { %v1424_v15 = vmul.f32 %v1406_v11, %v5164_v6  ;;  %v1435_v18 = vmul.f32 0.2, %v1428_v10  ;;  %v1444_v21 = vmax.f32 %v1430_v62, %v1437_v4  ;;  %v1433_v22 = vadd.f32 %v1426_v7, %v5171_v12 }
 0x20e   :  { %v4688_v19 = vpop.f32.mrf.mxu1 }
 0x20f   :  { %v1431_v24 = vadd.f32 %v1424_v15, %v5171_v12  ;;  %v1442_v26 = vmax.f32 %v1428_v10, %v1435_v18  ;;  %v1449_v32 = vpack.c.bf16 %v1444_v21, %v1443_v29  ;;  %v1440_v33 = vmul.f32 0.2, %v1433_v22 }
 0x210   :  { %v1409_v27 = vpop.f32.mrf.mxu1 }
 0x211   :  { %v1425_v30 = vmul.f32 %v1409_v27, %v5164_v6  ;;  %v1448_v44 = vpack.c.bf16 %v1442_v26, %v1441_v25  ;;  %v1438_v34 = vmul.f32 0.2, %v1431_v24  ;;  %v1447_v41 = vmax.f32 %v1433_v22, %v1440_v33  ;;  %v5022_v25 = vld [vmem:[%s5908_s2 + $0x70] sm:$0xff]  }
 0x212   :  { %v4705_v31 = vpop.f32.mrf.mxu1 }
 0x213   :  { %v1432_v35 = vadd.f32 %v1425_v30, %v5171_v12  ;;  %4693 = vmatprep.mubr.msk.bf16.mxu0 %vm45_vm1, %v1448_v44  ;;  %v1655_v38 = vmul.f32 %v4705_v31, %v5164_v6  ;;  %v1445_v42 = vmax.f32 %v1431_v24, %v1438_v34  ;;  %v1451_v54 = vpack.c.bf16 %v1447_v41, %v1447_v41 }
 0x214   :  { %v1623_v0 = vpop.f32.mrf.mxu1  ;;  %4694 = vmatmul.mubr.msk.bf16.vlgmr.msra.gmra.mxu0 %vm45_vm1, %v1449_v32 }
 0x215   :  { %v1439_v37 = vmul.f32 0.2, %v1432_v35  ;;  %v1653_v39 = vmul.f32 %v1623_v0, %v5164_v6  ;;  %4712 = vmatpush3.bf16.msra.mxu0 %v5019_v57  ;;  %v1662_v50 = vadd.f32 %v1655_v38, %v5171_v12 }
 0x216   :  { %v4706_v40 = vpop.f32.mrf.mxu1  ;;  %4713 = vmatprep.subr.bf16.mxu0 %v5020_v36 }
 0x217   :  { %v1446_v43 = vmax.f32 %v1432_v35, %v1439_v37  ;;  %v1656_v45 = vmul.f32 %v4706_v40, %v5164_v6  ;;  %v1660_v47 = vadd.f32 %v1653_v39, %v5171_v12  ;;  %v1669_v60 = vmul.f32 0.2, %v1662_v50  ;;  %v5023_v35 = vld [vmem:[%s5908_s2 + $0x88] sm:$0xff]  }
 0x218   :  { %v1626_v48 = vpop.f32.mrf.mxu1 }
 0x219   :  { %v1450_v49 = vpack.c.bf16 %v1446_v43, %v1445_v42  ;;  %v1663_v51 = vadd.f32 %v1656_v45, %v5171_v12  ;;  %v1654_v52 = vmul.f32 %v1626_v48, %v5164_v6  ;;  %4714 = vmatpush3.bf16.msra.mxu0 %v5020_v36  ;;  %v1667_v57 = vmul.f32 0.2, %v1660_v47 }
 0x21a   :  { %v4709_v53 = vpop.f32.mrf.mxu1  ;;  %4733 = vmatprep.subr.bf16.mxu0 %v5021_v46  ;;  %v1676_v11 = vmax.f32 %v1662_v50, %v1669_v60 }
 0x21b   :  { %v1670_v55 = vmul.f32 0.2, %v1663_v51  ;;  %v1659_v56 = vmul.f32 %v4709_v53, %v5164_v6  ;;  %4697 = vmatprep.mubr.msk.bf16.mxu0 %vm45_vm1, %v1450_v49  ;;  %v1661_v58 = vadd.f32 %v1654_v52, %v5171_v12  ;;  %v1674_v7 = vmax.f32 %v1660_v47, %v1667_v57 }
 0x21c   :  { %v1639_v59 = vpop.f32.mrf.mxu1  ;;  %4698 = vmatmul.mubr.msk.bf16.gmra.mxu0 %vm45_vm1, %v1451_v54 }
 0x21d   :  { %v1657_v61 = vmul.f32 %v1639_v59, %v5164_v6  ;;  %v1668_v62 = vmul.f32 0.2, %v1661_v58  ;;  %v1677_v2 = vmax.f32 %v1663_v51, %v1670_v55  ;;  %v1666_v3 = vadd.f32 %v1659_v56, %v5171_v12 }
 0x21e   :  { %v4710_v63 = vpop.f32.mrf.mxu1 }
 0x21f   :  { %v1664_v4 = vadd.f32 %v1657_v61, %v5171_v12  ;;  %v1675_v8 = vmax.f32 %v1661_v58, %v1668_v62  ;;  %v1682_v19 = vpack.c.bf16 %v1677_v2, %v1676_v11  ;;  %v1673_v21 = vmul.f32 0.2, %v1666_v3 }
 0x220   :  { %v1642_v10 = vpop.f32.mrf.mxu1 }
 0x221   :  { %v1658_v13 = vmul.f32 %v1642_v10, %v5164_v6  ;;  %v1681_v15 = vpack.c.bf16 %v1675_v8, %v1674_v7  ;;  %v1671_v22 = vmul.f32 0.2, %v1664_v4  ;;  %v1680_v31 = vmax.f32 %v1666_v3, %v1673_v21  ;;  %v5024_v7 = vld [vmem:[%s5908_s2 + $0x80] sm:$0xff]  }
 0x222   :  { %v4727_v18 = vpop.f32.mrf.mxu1 }
 0x223   :  { %v1665_v24 = vadd.f32 %v1658_v13, %v5171_v12  ;;  %4715 = vmatprep.mubr.msk.bf16.mxu0 %vm45_vm1, %v1681_v15  ;;  %v1888_v29 = vmul.f32 %v4727_v18, %v5164_v6  ;;  %v1678_v32 = vmax.f32 %v1664_v4, %v1671_v22  ;;  %v1684_v42 = vpack.c.bf16 %v1680_v31, %v1680_v31 }
 0x224   :  { %v1856_v26 = vpop.f32.mrf.mxu1  ;;  %4716 = vmatmul.mubr.msk.bf16.vlgmr.msra.gmra.mxu0 %vm45_vm1, %v1682_v19 }
 0x225   :  { %v1672_v27 = vmul.f32 0.2, %v1665_v24  ;;  %v1886_v30 = vmul.f32 %v1856_v26, %v5164_v6  ;;  %4734 = vmatpush3.bf16.msra.mxu0 %v5021_v46  ;;  %v1895_v38 = vadd.f32 %v1888_v29, %v5171_v12 }
 0x226   :  { %v4728_v44 = vpop.f32.mrf.mxu1  ;;  %4735 = vmatprep.subr.bf16.mxu0 %v5022_v25 }
 0x227   :  { %v1679_v33 = vmax.f32 %v1665_v24, %v1672_v27  ;;  %v1889_v34 = vmul.f32 %v4728_v44, %v5164_v6  ;;  %v1893_v36 = vadd.f32 %v1886_v30, %v5171_v12  ;;  %v1902_v49 = vmul.f32 0.2, %v1895_v38  ;;  %v5025_v24 = vld [vmem:[%s5908_s2 + $0x98] sm:$0xff]  }
 0x228   :  { %v1859_v0 = vpop.f32.mrf.mxu1 }
 0x229   :  { %v1683_v37 = vpack.c.bf16 %v1679_v33, %v1678_v32  ;;  %v1896_v39 = vadd.f32 %v1889_v34, %v5171_v12  ;;  %v1887_v40 = vmul.f32 %v1859_v0, %v5164_v6  ;;  %4736 = vmatpush3.bf16.msra.mxu0 %v5022_v25  ;;  %v1900_v46 = vmul.f32 0.2, %v1893_v36 }
 0x22a   :  { %v4731_v41 = vpop.f32.mrf.mxu1  ;;  %4755 = vmatprep.subr.bf16.mxu0 %v5023_v35  ;;  %v1909_v59 = vmax.f32 %v1895_v38, %v1902_v49 }
 0x22b   :  { %v1903_v43 = vmul.f32 0.2, %v1896_v39  ;;  %v1892_v45 = vmul.f32 %v4731_v41, %v5164_v6  ;;  %4719 = vmatprep.mubr.msk.bf16.mxu0 %vm45_vm1, %v1683_v37  ;;  %v1894_v47 = vadd.f32 %v1887_v40, %v5171_v12  ;;  %v1907_v56 = vmax.f32 %v1893_v36, %v1900_v46 }
 0x22c   :  { %v1872_v48 = vpop.f32.mrf.mxu1  ;;  %4720 = vmatmul.mubr.msk.bf16.gmra.mxu0 %vm45_vm1, %v1684_v42 }
 0x22d   :  { %v1890_v50 = vmul.f32 %v1872_v48, %v5164_v6  ;;  %v1901_v51 = vmul.f32 0.2, %v1894_v47  ;;  %v1910_v53 = vmax.f32 %v1896_v39, %v1903_v43  ;;  %v1899_v54 = vadd.f32 %v1892_v45, %v5171_v12 }
 0x22e   :  { %v4732_v52 = vpop.f32.mrf.mxu1 }
 0x22f   :  { %v1897_v55 = vadd.f32 %v1890_v50, %v5171_v12  ;;  %v1908_v57 = vmax.f32 %v1894_v47, %v1901_v51  ;;  %v1915_v63 = vpack.c.bf16 %v1910_v53, %v1909_v59  ;;  %v1906_v2 = vmul.f32 0.2, %v1899_v54 }
 0x230   :  { %v1875_v58 = vpop.f32.mrf.mxu1 }
 0x231   :  { %v1891_v60 = vmul.f32 %v1875_v58, %v5164_v6  ;;  %v1914_v61 = vpack.c.bf16 %v1908_v57, %v1907_v56  ;;  %v1904_v3 = vmul.f32 0.2, %v1897_v55  ;;  %v1913_v18 = vmax.f32 %v1899_v54, %v1906_v2  ;;  %v5026_v56 = vld [vmem:[%s5908_s2 + $0x90] sm:$0xff]  }
 0x232   :  { %v4749_v62 = vpop.f32.mrf.mxu1 }
 0x233   :  { %v1898_v4 = vadd.f32 %v1891_v60, %v5171_v12  ;;  %4737 = vmatprep.mubr.msk.bf16.mxu0 %vm45_vm1, %v1914_v61  ;;  %v2121_v11 = vmul.f32 %v4749_v62, %v5164_v6  ;;  %v1911_v19 = vmax.f32 %v1897_v55, %v1904_v3  ;;  %v1917_v32 = vpack.c.bf16 %v1913_v18, %v1913_v18 }
 0x234   :  { %v2089_v8 = vpop.f32.mrf.mxu1  ;;  %4738 = vmatmul.mubr.msk.bf16.vlgmr.msra.gmra.mxu0 %vm45_vm1, %v1915_v63 }
 0x235   :  { %v1905_v10 = vmul.f32 0.2, %v1898_v4  ;;  %v2119_v13 = vmul.f32 %v2089_v8, %v5164_v6  ;;  %4756 = vmatpush3.bf16.msra.mxu0 %v5023_v35  ;;  %v2128_v29 = vadd.f32 %v2121_v11, %v5171_v12 }
 0x236   :  { %v4750_v15 = vpop.f32.mrf.mxu1  ;;  %4757 = vmatprep.subr.bf16.mxu0 %v5024_v7 }
 0x237   :  { %v1912_v21 = vmax.f32 %v1898_v4, %v1905_v10  ;;  %v2122_v22 = vmul.f32 %v4750_v15, %v5164_v6  ;;  %v2126_v25 = vadd.f32 %v2119_v13, %v5171_v12  ;;  %v2135_v37 = vmul.f32 0.2, %v2128_v29  ;;  %v5027_v4 = vld [vmem:[%s5908_s2 + $0xa8] sm:$0xff]  }
 0x238   :  { %v2092_v26 = vpop.f32.mrf.mxu1 }
 0x239   :  { %v1916_v27 = vpack.c.bf16 %v1912_v21, %v1911_v19  ;;  %v2129_v30 = vadd.f32 %v2122_v22, %v5171_v12  ;;  %v2120_v44 = vmul.f32 %v2092_v26, %v5164_v6  ;;  %4758 = vmatpush3.bf16.msra.mxu0 %v5024_v7  ;;  %v2133_v35 = vmul.f32 0.2, %v2126_v25 }
 0x23a   :  { %v4753_v31 = vpop.f32.mrf.mxu1  ;;  %4777 = vmatprep.subr.bf16.mxu0 %v5025_v24  ;;  %v2142_v48 = vmax.f32 %v2128_v29, %v2135_v37 }
 0x23b   :  { %v2136_v33 = vmul.f32 0.2, %v2129_v30  ;;  %v2125_v34 = vmul.f32 %v4753_v31, %v5164_v6  ;;  %4741 = vmatprep.mubr.msk.bf16.mxu0 %vm45_vm1, %v1916_v27  ;;  %v2127_v36 = vadd.f32 %v2120_v44, %v5171_v12  ;;  %v2140_v45 = vmax.f32 %v2126_v25, %v2133_v35 }
 0x23c   :  { %v2105_v0 = vpop.f32.mrf.mxu1  ;;  %4742 = vmatmul.mubr.msk.bf16.gmra.mxu0 %vm45_vm1, %v1917_v32 }
 0x23d   :  { %v2123_v38 = vmul.f32 %v2105_v0, %v5164_v6  ;;  %v2134_v39 = vmul.f32 0.2, %v2127_v36  ;;  %v2143_v41 = vmax.f32 %v2129_v30, %v2136_v33  ;;  %v2132_v42 = vadd.f32 %v2125_v34, %v5171_v12 }
 0x23e   :  { %v4754_v40 = vpop.f32.mrf.mxu1 }
 0x23f   :  { %v2130_v43 = vadd.f32 %v2123_v38, %v5171_v12  ;;  %v2141_v46 = vmax.f32 %v2127_v36, %v2134_v39  ;;  %v2148_v52 = vpack.c.bf16 %v2143_v41, %v2142_v48  ;;  %v2139_v53 = vmul.f32 0.2, %v2132_v42 }
 0x240   :  { %v2108_v47 = vpop.f32.mrf.mxu1 }
 0x241   :  { %v2124_v49 = vmul.f32 %v2108_v47, %v5164_v6  ;;  %v2147_v50 = vpack.c.bf16 %v2141_v46, %v2140_v45  ;;  %v2137_v54 = vmul.f32 0.2, %v2130_v43  ;;  %v2146_v62 = vmax.f32 %v2132_v42, %v2139_v53  ;;  %v5028_v45 = vld [vmem:[%s5908_s2 + $0xa0] sm:$0xff]  }
 0x242   :  { %v4771_v51 = vpop.f32.mrf.mxu1 }
 0x243   :  { %v2131_v55 = vadd.f32 %v2124_v49, %v5171_v12  ;;  %4759 = vmatprep.mubr.msk.bf16.mxu0 %vm45_vm1, %v2147_v50  ;;  %v2354_v59 = vmul.f32 %v4771_v51, %v5164_v6  ;;  %v2144_v63 = vmax.f32 %v2130_v43, %v2137_v54  ;;  %v2150_v19 = vpack.c.bf16 %v2146_v62, %v2146_v62 }
 0x244   :  { %v2322_v57 = vpop.f32.mrf.mxu1  ;;  %4760 = vmatmul.mubr.msk.bf16.vlgmr.msra.gmra.mxu0 %vm45_vm1, %v2148_v52 }
 0x245   :  { %v2138_v58 = vmul.f32 0.2, %v2131_v55  ;;  %v2352_v60 = vmul.f32 %v2322_v57, %v5164_v6  ;;  %4778 = vmatpush3.bf16.msra.mxu0 %v5025_v24  ;;  %v2361_v11 = vadd.f32 %v2354_v59, %v5171_v12 }
 0x246   :  { %v4772_v61 = vpop.f32.mrf.mxu1  ;;  %4779 = vmatprep.subr.bf16.mxu0 %v5026_v56 }
 0x247   :  { %v2145_v2 = vmax.f32 %v2131_v55, %v2138_v58  ;;  %v2355_v3 = vmul.f32 %v4772_v61, %v5164_v6  ;;  %v2359_v7 = vadd.f32 %v2352_v60, %v5171_v12  ;;  %v2368_v27 = vmul.f32 0.2, %v2361_v11  ;;  %v5029_v55 = vld [vmem:[%s5908_s2 + $0xb8] sm:$0xff]  }
 0x248   :  { %v2325_v8 = vpop.f32.mrf.mxu1 }
 0x249   :  { %v2149_v10 = vpack.c.bf16 %v2145_v2, %v2144_v63  ;;  %v2362_v13 = vadd.f32 %v2355_v3, %v5171_v12  ;;  %v2353_v15 = vmul.f32 %v2325_v8, %v5164_v6  ;;  %4780 = vmatpush3.bf16.msra.mxu0 %v5026_v56  ;;  %v2366_v24 = vmul.f32 0.2, %v2359_v7 }
 0x24a   :  { %v4775_v18 = vpop.f32.mrf.mxu1  ;;  %4799 = vmatprep.subr.bf16.mxu0 %v5027_v4  ;;  %v2375_v0 = vmax.f32 %v2361_v11, %v2368_v27 }
 0x24b   :  { %v2369_v21 = vmul.f32 0.2, %v2362_v13  ;;  %v2358_v22 = vmul.f32 %v4775_v18, %v5164_v6  ;;  %4763 = vmatprep.mubr.msk.bf16.mxu0 %vm45_vm1, %v2149_v10  ;;  %v2360_v25 = vadd.f32 %v2353_v15, %v5171_v12  ;;  %v2373_v34 = vmax.f32 %v2359_v7, %v2366_v24 }
 0x24c   :  { %v2338_v26 = vpop.f32.mrf.mxu1  ;;  %4764 = vmatmul.mubr.msk.bf16.gmra.mxu0 %vm45_vm1, %v2150_v19 }
 0x24d   :  { %v2356_v29 = vmul.f32 %v2338_v26, %v5164_v6  ;;  %v2367_v30 = vmul.f32 0.2, %v2360_v25  ;;  %v2376_v31 = vmax.f32 %v2362_v13, %v2369_v21  ;;  %v2365_v32 = vadd.f32 %v2358_v22, %v5171_v12 }
 0x24e   :  { %v4776_v44 = vpop.f32.mrf.mxu1 }
 0x24f   :  { %v2363_v33 = vadd.f32 %v2356_v29, %v5171_v12  ;;  %v2374_v35 = vmax.f32 %v2360_v25, %v2367_v30  ;;  %v2381_v40 = vpack.c.bf16 %v2376_v31, %v2375_v0  ;;  %v2372_v41 = vmul.f32 0.2, %v2365_v32 }
 0x250   :  { %v2341_v36 = vpop.f32.mrf.mxu1 }
 0x251   :  { %v2357_v37 = vmul.f32 %v2341_v36, %v5164_v6  ;;  %v2380_v38 = vpack.c.bf16 %v2374_v35, %v2373_v34  ;;  %v2370_v42 = vmul.f32 0.2, %v2363_v33  ;;  %v2379_v51 = vmax.f32 %v2365_v32, %v2372_v41  ;;  %v5030_v34 = vld [vmem:[%s5908_s2 + $0xb0] sm:$0xff]  }
 0x252   :  { %v4793_v39 = vpop.f32.mrf.mxu1 }
 0x253   :  { %v2364_v43 = vadd.f32 %v2357_v37, %v5171_v12  ;;  %4781 = vmatprep.mubr.msk.bf16.mxu0 %vm45_vm1, %v2380_v38  ;;  %v2587_v48 = vmul.f32 %v4793_v39, %v5164_v6  ;;  %v2377_v52 = vmax.f32 %v2363_v33, %v2370_v42  ;;  %v2383_v63 = vpack.c.bf16 %v2379_v51, %v2379_v51 }
 0x254   :  { %v2555_v46 = vpop.f32.mrf.mxu1  ;;  %4782 = vmatmul.mubr.msk.bf16.vlgmr.msra.gmra.mxu0 %vm45_vm1, %v2381_v40 }
 0x255   :  { %v2371_v47 = vmul.f32 0.2, %v2364_v43  ;;  %v2585_v49 = vmul.f32 %v2555_v46, %v5164_v6  ;;  %4800 = vmatpush3.bf16.msra.mxu0 %v5027_v4  ;;  %v2594_v59 = vadd.f32 %v2587_v48, %v5171_v12 }
 0x256   :  { %v4794_v50 = vpop.f32.mrf.mxu1  ;;  %4801 = vmatprep.subr.bf16.mxu0 %v5028_v45 }
 0x257   :  { %v2378_v53 = vmax.f32 %v2364_v43, %v2371_v47  ;;  %v2588_v54 = vmul.f32 %v4794_v50, %v5164_v6  ;;  %v2592_v56 = vadd.f32 %v2585_v49, %v5171_v12  ;;  %v2601_v10 = vmul.f32 0.2, %v2594_v59  ;;  %v5031_v43 = vld [vmem:[%s5908_s2 + $0xc8] sm:$0xff]  }
 0x258   :  { %v2558_v57 = vpop.f32.mrf.mxu1 }
 0x259   :  { %v2382_v58 = vpack.c.bf16 %v2378_v53, %v2377_v52  ;;  %v2595_v60 = vadd.f32 %v2588_v54, %v5171_v12  ;;  %v2586_v61 = vmul.f32 %v2558_v57, %v5164_v6  ;;  %4802 = vmatpush3.bf16.msra.mxu0 %v5028_v45  ;;  %v2599_v4 = vmul.f32 0.2, %v2592_v56 }
 0x25a   :  { %v4797_v62 = vpop.f32.mrf.mxu1  ;;  %4821 = vmatprep.subr.bf16.mxu0 %v5029_v55  ;;  %v2608_v26 = vmax.f32 %v2594_v59, %v2601_v10 }
 0x25b   :  { %v2602_v2 = vmul.f32 0.2, %v2595_v60  ;;  %v2591_v3 = vmul.f32 %v4797_v62, %v5164_v6  ;;  %4785 = vmatprep.mubr.msk.bf16.mxu0 %vm45_vm1, %v2382_v58  ;;  %v2593_v7 = vadd.f32 %v2586_v61, %v5171_v12  ;;  %v2606_v22 = vmax.f32 %v2592_v56, %v2599_v4 }
 0x25c   :  { %v2571_v8 = vpop.f32.mrf.mxu1  ;;  %4786 = vmatmul.mubr.msk.bf16.gmra.mxu0 %vm45_vm1, %v2383_v63 }
 0x25d   :  { %v2589_v11 = vmul.f32 %v2571_v8, %v5164_v6  ;;  %v2600_v13 = vmul.f32 0.2, %v2593_v7  ;;  %v2609_v18 = vmax.f32 %v2595_v60, %v2602_v2  ;;  %v2598_v19 = vadd.f32 %v2591_v3, %v5171_v12 }
 0x25e   :  { %v4798_v15 = vpop.f32.mrf.mxu1 }
 0x25f   :  { %v2596_v21 = vadd.f32 %v2589_v11, %v5171_v12  ;;  %v2607_v24 = vmax.f32 %v2593_v7, %v2600_v13  ;;  %v2614_v44 = vpack.c.bf16 %v2609_v18, %v2608_v26  ;;  %v2605_v31 = vmul.f32 0.2, %v2598_v19 }
 0x260   :  { %v2574_v25 = vpop.f32.mrf.mxu1 }
 0x261   :  { %v2590_v27 = vmul.f32 %v2574_v25, %v5164_v6  ;;  %v2613_v29 = vpack.c.bf16 %v2607_v24, %v2606_v22  ;;  %v2603_v32 = vmul.f32 0.2, %v2596_v21  ;;  %v2612_v39 = vmax.f32 %v2598_v19, %v2605_v31  ;;  %v5032_v22 = vld [vmem:[%s5908_s2 + $0xc0] sm:$0xff]  }
 0x262   :  { %v4815_v30 = vpop.f32.mrf.mxu1 }
 0x263   :  { %v2597_v33 = vadd.f32 %v2590_v27, %v5171_v12  ;;  %4803 = vmatprep.mubr.msk.bf16.mxu0 %vm45_vm1, %v2613_v29  ;;  %v2820_v0 = vmul.f32 %v4815_v30, %v5164_v6  ;;  %v2610_v40 = vmax.f32 %v2596_v21, %v2603_v32  ;;  %v2616_v52 = vpack.c.bf16 %v2612_v39, %v2612_v39 }
 0x264   :  { %v2788_v35 = vpop.f32.mrf.mxu1  ;;  %4804 = vmatmul.mubr.msk.bf16.vlgmr.msra.gmra.mxu0 %vm45_vm1, %v2614_v44 }
 0x265   :  { %v2604_v36 = vmul.f32 0.2, %v2597_v33  ;;  %v2818_v37 = vmul.f32 %v2788_v35, %v5164_v6  ;;  %4822 = vmatpush3.bf16.msra.mxu0 %v5029_v55  ;;  %v2827_v48 = vadd.f32 %v2820_v0, %v5171_v12 }
 0x266   :  { %v4816_v38 = vpop.f32.mrf.mxu1  ;;  %4823 = vmatprep.subr.bf16.mxu0 %v5030_v34 }
 0x267   :  { %v2611_v41 = vmax.f32 %v2597_v33, %v2604_v36  ;;  %v2821_v42 = vmul.f32 %v4816_v38, %v5164_v6  ;;  %v2825_v45 = vadd.f32 %v2818_v37, %v5171_v12  ;;  %v2834_v58 = vmul.f32 0.2, %v2827_v48  ;;  %v5033_v33 = vld [vmem:[%s5908_s2 + $0xd8] sm:$0xff]  }
 0x268   :  { %v2791_v46 = vpop.f32.mrf.mxu1 }
 0x269   :  { %v2615_v47 = vpack.c.bf16 %v2611_v41, %v2610_v40  ;;  %v2828_v49 = vadd.f32 %v2821_v42, %v5171_v12  ;;  %v2819_v50 = vmul.f32 %v2791_v46, %v5164_v6  ;;  %4824 = vmatpush3.bf16.msra.mxu0 %v5030_v34  ;;  %v2832_v55 = vmul.f32 0.2, %v2825_v45 }
 0x26a   :  { %v4819_v51 = vpop.f32.mrf.mxu1  ;;  %4843 = vmatprep.subr.bf16.mxu0 %v5031_v43  ;;  %v2841_v8 = vmax.f32 %v2827_v48, %v2834_v58 }
 0x26b   :  { %v2835_v53 = vmul.f32 0.2, %v2828_v49  ;;  %v2824_v54 = vmul.f32 %v4819_v51, %v5164_v6  ;;  %4807 = vmatprep.mubr.msk.bf16.mxu0 %vm45_vm1, %v2615_v47  ;;  %v2826_v56 = vadd.f32 %v2819_v50, %v5171_v12  ;;  %v2839_v3 = vmax.f32 %v2825_v45, %v2832_v55 }
 0x26c   :  { %v2804_v57 = vpop.f32.mrf.mxu1  ;;  %4808 = vmatmul.mubr.msk.bf16.gmra.mxu0 %vm45_vm1, %v2616_v52 }
 0x26d   :  { %v2822_v59 = vmul.f32 %v2804_v57, %v5164_v6  ;;  %v2833_v60 = vmul.f32 0.2, %v2826_v56  ;;  %v2842_v62 = vmax.f32 %v2828_v49, %v2835_v53  ;;  %v2831_v63 = vadd.f32 %v2824_v54, %v5171_v12 }
 0x26e   :  { %v4820_v61 = vpop.f32.mrf.mxu1 }
 0x26f   :  { %v2829_v2 = vadd.f32 %v2822_v59, %v5171_v12  ;;  %v2840_v4 = vmax.f32 %v2826_v56, %v2833_v60  ;;  %v2847_v15 = vpack.c.bf16 %v2842_v62, %v2841_v8  ;;  %v2838_v18 = vmul.f32 0.2, %v2831_v63 }
 0x270   :  { %v2807_v7 = vpop.f32.mrf.mxu1 }
 0x271   :  { %v2823_v10 = vmul.f32 %v2807_v7, %v5164_v6  ;;  %v2846_v11 = vpack.c.bf16 %v2840_v4, %v2839_v3  ;;  %v2836_v19 = vmul.f32 0.2, %v2829_v2  ;;  %v2845_v30 = vmax.f32 %v2831_v63, %v2838_v18  ;;  %v5034_v3 = vld [vmem:[%s5908_s2 + $0xd0] sm:$0xff]  }
 0x272   :  { %v4837_v13 = vpop.f32.mrf.mxu1 }
 0x273   :  { %v2830_v21 = vadd.f32 %v2823_v10, %v5171_v12  ;;  %4825 = vmatprep.mubr.msk.bf16.mxu0 %vm45_vm1, %v2846_v11  ;;  %v3053_v26 = vmul.f32 %v4837_v13, %v5164_v6  ;;  %v2843_v44 = vmax.f32 %v2829_v2, %v2836_v19  ;;  %v2849_v40 = vpack.c.bf16 %v2845_v30, %v2845_v30 }
 0x274   :  { %v3021_v24 = vpop.f32.mrf.mxu1  ;;  %4826 = vmatmul.mubr.msk.bf16.vlgmr.msra.gmra.mxu0 %vm45_vm1, %v2847_v15 }
 0x275   :  { %v2837_v25 = vmul.f32 0.2, %v2830_v21  ;;  %v3051_v27 = vmul.f32 %v3021_v24, %v5164_v6  ;;  %4844 = vmatpush3.bf16.msra.mxu0 %v5031_v43  ;;  %v3060_v0 = vadd.f32 %v3053_v26, %v5171_v12 }
 0x276   :  { %v4838_v29 = vpop.f32.mrf.mxu1  ;;  %4845 = vmatprep.subr.bf16.mxu0 %v5032_v22 }
 0x277   :  { %v2844_v31 = vmax.f32 %v2830_v21, %v2837_v25  ;;  %v3054_v32 = vmul.f32 %v4838_v29, %v5164_v6  ;;  %v3058_v34 = vadd.f32 %v3051_v27, %v5171_v12  ;;  %v3067_v47 = vmul.f32 0.2, %v3060_v0  ;;  %v5035_v21 = vld [vmem:[%s5908_s2 + $0xe8] sm:$0xff]  }
 0x278   :  { %v3024_v35 = vpop.f32.mrf.mxu1 }
 0x279   :  { %v2848_v36 = vpack.c.bf16 %v2844_v31, %v2843_v44  ;;  %v3061_v37 = vadd.f32 %v3054_v32, %v5171_v12  ;;  %v3052_v38 = vmul.f32 %v3024_v35, %v5164_v6  ;;  %4846 = vmatpush3.bf16.msra.mxu0 %v5032_v22  ;;  %v3065_v43 = vmul.f32 0.2, %v3058_v34 }
 0x27a   :  { %v4841_v39 = vpop.f32.mrf.mxu1  ;;  %4865 = vmatprep.subr.bf16.mxu0 %v5033_v33  ;;  %v3074_v57 = vmax.f32 %v3060_v0, %v3067_v47 }
 0x27b   :  { %v3068_v41 = vmul.f32 0.2, %v3061_v37  ;;  %v3057_v42 = vmul.f32 %v4841_v39, %v5164_v6  ;;  %4829 = vmatprep.mubr.msk.bf16.mxu0 %vm45_vm1, %v2848_v36  ;;  %v3059_v45 = vadd.f32 %v3052_v38, %v5171_v12  ;;  %v3072_v54 = vmax.f32 %v3058_v34, %v3065_v43 }
 0x27c   :  { %v3037_v46 = vpop.f32.mrf.mxu1  ;;  %4830 = vmatmul.mubr.msk.bf16.gmra.mxu0 %vm45_vm1, %v2849_v40 }
 0x27d   :  { %v3055_v48 = vmul.f32 %v3037_v46, %v5164_v6  ;;  %v3066_v49 = vmul.f32 0.2, %v3059_v45  ;;  %v3075_v51 = vmax.f32 %v3061_v37, %v3068_v41  ;;  %v3064_v52 = vadd.f32 %v3057_v42, %v5171_v12 }
 0x27e   :  { %v4842_v50 = vpop.f32.mrf.mxu1 }
 0x27f   :  { %v3062_v53 = vadd.f32 %v3055_v48, %v5171_v12  ;;  %v3073_v55 = vmax.f32 %v3059_v45, %v3066_v49  ;;  %v3080_v61 = vpack.c.bf16 %v3075_v51, %v3074_v57  ;;  %v3071_v62 = vmul.f32 0.2, %v3064_v52 }
 0x280   :  { %v3040_v56 = vpop.f32.mrf.mxu1 }
 0x281   :  { %v3056_v58 = vmul.f32 %v3040_v56, %v5164_v6  ;;  %v3079_v59 = vpack.c.bf16 %v3073_v55, %v3072_v54  ;;  %v3069_v63 = vmul.f32 0.2, %v3062_v53  ;;  %v3078_v13 = vmax.f32 %v3064_v52, %v3071_v62  ;;  %v5036_v54 = vld [vmem:[%s5908_s2 + $0xe0] sm:$0xff]  }
 0x282   :  { %v4859_v60 = vpop.f32.mrf.mxu1 }
 0x283   :  { %v3063_v2 = vadd.f32 %v3056_v58, %v5171_v12  ;;  %4847 = vmatprep.mubr.msk.bf16.mxu0 %vm45_vm1, %v3079_v59  ;;  %v3286_v8 = vmul.f32 %v4859_v60, %v5164_v6  ;;  %v3076_v15 = vmax.f32 %v3062_v53, %v3069_v63  ;;  %v3082_v44 = vpack.c.bf16 %v3078_v13, %v3078_v13 }
 0x284   :  { %v3254_v4 = vpop.f32.mrf.mxu1  ;;  %4848 = vmatmul.mubr.msk.bf16.vlgmr.msra.gmra.mxu0 %vm45_vm1, %v3080_v61 }
 0x285   :  { %v3070_v7 = vmul.f32 0.2, %v3063_v2  ;;  %v3284_v10 = vmul.f32 %v3254_v4, %v5164_v6  ;;  %4866 = vmatpush3.bf16.msra.mxu0 %v5033_v33  ;;  %v3293_v26 = vadd.f32 %v3286_v8, %v5171_v12 }
 0x286   :  { %v4860_v11 = vpop.f32.mrf.mxu1  ;;  %4867 = vmatprep.subr.bf16.mxu0 %v5034_v3 }
 0x287   :  { %v3077_v18 = vmax.f32 %v3063_v2, %v3070_v7  ;;  %v3287_v19 = vmul.f32 %v4860_v11, %v5164_v6  ;;  %v3291_v22 = vadd.f32 %v3284_v10, %v5171_v12  ;;  %v3300_v36 = vmul.f32 0.2, %v3293_v26  ;;  %v5037_v2 = vld [vmem:[%s5908_s2 + $0xf8] sm:$0xff]  }
 0x288   :  { %v3257_v24 = vpop.f32.mrf.mxu1 }
 0x289   :  { %v3081_v25 = vpack.c.bf16 %v3077_v18, %v3076_v15  ;;  %v3294_v27 = vadd.f32 %v3287_v19, %v5171_v12  ;;  %v3285_v29 = vmul.f32 %v3257_v24, %v5164_v6  ;;  %4868 = vmatpush3.bf16.msra.mxu0 %v5034_v3  ;;  %v3298_v33 = vmul.f32 0.2, %v3291_v22 }
 0x28a   :  { %v4863_v30 = vpop.f32.mrf.mxu1  ;;  %4887 = vmatprep.subr.bf16.mxu0 %v5035_v21  ;;  %v3307_v46 = vmax.f32 %v3293_v26, %v3300_v36 }
 0x28b   :  { %v3301_v31 = vmul.f32 0.2, %v3294_v27  ;;  %v3290_v32 = vmul.f32 %v4863_v30, %v5164_v6  ;;  %4851 = vmatprep.mubr.msk.bf16.mxu0 %vm45_vm1, %v3081_v25  ;;  %v3292_v34 = vadd.f32 %v3285_v29, %v5171_v12  ;;  %v3305_v42 = vmax.f32 %v3291_v22, %v3298_v33 }
 0x28c   :  { %v3270_v35 = vpop.f32.mrf.mxu1  ;;  %4852 = vmatmul.mubr.msk.bf16.gmra.mxu0 %vm45_vm1, %v3082_v44 }
 0x28d   :  { %v3288_v0 = vmul.f32 %v3270_v35, %v5164_v6  ;;  %v3299_v37 = vmul.f32 0.2, %v3292_v34  ;;  %v3308_v39 = vmax.f32 %v3294_v27, %v3301_v31  ;;  %v3297_v40 = vadd.f32 %v3290_v32, %v5171_v12 }
 0x28e   :  { %v4864_v38 = vpop.f32.mrf.mxu1 }
 0x28f   :  { %v3295_v41 = vadd.f32 %v3288_v0, %v5171_v12  ;;  %v3306_v43 = vmax.f32 %v3292_v34, %v3299_v37  ;;  %v3313_v50 = vpack.c.bf16 %v3308_v39, %v3307_v46  ;;  %v3304_v51 = vmul.f32 0.2, %v3297_v40  ;;  %v609_v0 = vpop.f32.mrf.mxu0 }
 0x290   :  { %v3273_v45 = vpop.f32.mrf.mxu1 }
 0x291   :  { %v3289_v47 = vmul.f32 %v3273_v45, %v5164_v6  ;;  %v3312_v48 = vpack.c.bf16 %v3306_v43, %v3305_v42  ;;  %v3302_v52 = vmul.f32 0.2, %v3295_v41  ;;  %v3311_v60 = vmax.f32 %v3297_v40, %v3304_v51  ;;  %v5038_v43 = vld [vmem:[%s5908_s2 + $0xf0] sm:$0xff]  }
 0x292   :  { %v4881_v49 = vpop.f32.mrf.mxu1 }
 0x293   :  { %v3296_v53 = vadd.f32 %v3289_v47, %v5171_v12  ;;  %4869 = vmatprep.mubr.msk.bf16.mxu0 %vm45_vm1, %v3312_v48  ;;  %v3519_v57 = vmul.f32 %v4881_v49, %v5164_v6  ;;  %v3309_v61 = vmax.f32 %v3295_v41, %v3302_v52  ;;  %v3315_v15 = vpack.c.bf16 %v3311_v60, %v3311_v60 }
 0x294   :  { %v3487_v55 = vpop.f32.mrf.mxu1  ;;  %4870 = vmatmul.mubr.msk.bf16.vlgmr.msra.gmra.mxu0 %vm45_vm1, %v3313_v50 }
 0x295   :  { %v3303_v56 = vmul.f32 0.2, %v3296_v53  ;;  %v3517_v58 = vmul.f32 %v3487_v55, %v5164_v6  ;;  %4888 = vmatpush3.bf16.msra.mxu0 %v5035_v21  ;;  %v3526_v8 = vadd.f32 %v3519_v57, %v5171_v12 }
 0x296   :  { %v4882_v59 = vpop.f32.mrf.mxu1  ;;  %4889 = vmatprep.subr.bf16.mxu0 %v5036_v54 }
 0x297   :  { %v3310_v62 = vmax.f32 %v3296_v53, %v3303_v56  ;;  %v3520_v63 = vmul.f32 %v4882_v59, %v5164_v6  ;;  %v3524_v3 = vadd.f32 %v3517_v58, %v5171_v12  ;;  %v3533_v25 = vmul.f32 0.2, %v3526_v8 }
 0x298   :  { %v3490_v4 = vpop.f32.mrf.mxu1 }
 0x299   :  { %v3314_v7 = vpack.c.bf16 %v3310_v62, %v3309_v61  ;;  %v3527_v10 = vadd.f32 %v3520_v63, %v5171_v12  ;;  %v3518_v11 = vmul.f32 %v3490_v4, %v5164_v6  ;;  %4890 = vmatpush3.bf16.msra.mxu0 %v5036_v54  ;;  %v3531_v21 = vmul.f32 0.2, %v3524_v3 }
 0x29a   :  { %v4885_v13 = vpop.f32.mrf.mxu1  ;;  %4909 = vmatprep.subr.bf16.mxu0 %v5037_v2  ;;  %v3540_v35 = vmax.f32 %v3526_v8, %v3533_v25 }
 0x29b   :  { %v3534_v18 = vmul.f32 0.2, %v3527_v10  ;;  %v3523_v19 = vmul.f32 %v4885_v13, %v5164_v6  ;;  %4873 = vmatprep.mubr.msk.bf16.mxu0 %vm45_vm1, %v3314_v7  ;;  %v3525_v22 = vadd.f32 %v3518_v11, %v5171_v12  ;;  %v3538_v32 = vmax.f32 %v3524_v3, %v3531_v21 }
 0x29c   :  { %v3503_v24 = vpop.f32.mrf.mxu1  ;;  %4874 = vmatmul.mubr.msk.bf16.gmra.mxu0 %vm45_vm1, %v3315_v15 }
 0x29d   :  { %v3521_v26 = vmul.f32 %v3503_v24, %v5164_v6  ;;  %v3532_v27 = vmul.f32 0.2, %v3525_v22  ;;  %v3541_v30 = vmax.f32 %v3527_v10, %v3534_v18  ;;  %v3530_v44 = vadd.f32 %v3523_v19, %v5171_v12 }
 0x29e   :  { %v4886_v29 = vpop.f32.mrf.mxu1 }
 0x29f   :  { %v3528_v31 = vadd.f32 %v3521_v26, %v5171_v12  ;;  %v3539_v33 = vmax.f32 %v3525_v22, %v3532_v27  ;;  %v3546_v39 = vpack.c.bf16 %v3541_v30, %v3540_v35  ;;  %v3537_v40 = vmul.f32 0.2, %v3530_v44 }
 0x2a0   :  { %v3506_v34 = vpop.f32.mrf.mxu1 }
 0x2a1   :  { %v3522_v36 = vmul.f32 %v3506_v34, %v5164_v6  ;;  %v3545_v37 = vpack.c.bf16 %v3539_v33, %v3538_v32  ;;  %v3535_v41 = vmul.f32 0.2, %v3528_v31  ;;  %v3544_v53 = vmax.f32 %v3530_v44, %v3537_v40 }
 0x2a2   :  { %v4903_v38 = vpop.f32.mrf.mxu1 }
 0x2a3   :  { %v3529_v42 = vadd.f32 %v3522_v36, %v5171_v12  ;;  %4891 = vmatprep.mubr.msk.bf16.mxu0 %vm45_vm1, %v3545_v37  ;;  %v3752_v48 = vmul.f32 %v4903_v38, %v5164_v6  ;;  %v3542_v54 = vmax.f32 %v3528_v31, %v3535_v41  ;;  %v3548_v7 = vpack.c.bf16 %v3544_v53, %v3544_v53 }
 0x2a4   :  { %v4629_v45 = vpop.f32.mrf.mxu0  ;;  %v3720_v46 = vpop.f32.mrf.mxu1  ;;  %4892 = vmatmul.mubr.msk.bf16.vlgmr.msra.gmra.mxu0 %vm45_vm1, %v3546_v39 }
 0x2a5   :  { %v3536_v47 = vmul.f32 0.2, %v3529_v42  ;;  %v848_v49 = vadd.f32 %v4629_v45, %v5428_v5  ;;  %v3750_v50 = vmul.f32 %v3720_v46, %v5164_v6  ;;  %4910 = vmatpush3.bf16.msra.mxu0 %v5037_v2  ;;  %v594_v5 = vadd.f32 %v5445_v17, %v5443_v16 }
 0x2a6   :  { %v816_v51 = vpop.f32.mrf.mxu0  ;;  %v4904_v52 = vpop.f32.mrf.mxu1  ;;  %4911 = vmatprep.subr.bf16.mxu0 %v5038_v43  ;;  %v3759_v62 = vadd.f32 %v3752_v48, %v5171_v12 }
 0x2a7   :  { %v3543_v55 = vmax.f32 %v3529_v42, %v3536_v47  ;;  %v846_v56 = vadd.f32 %v816_v51, %v5433_v9  ;;  %v3757_v57 = vadd.f32 %v3750_v50, %v5171_v12  ;;  %v3753_v58 = vmul.f32 %v4904_v52, %v5164_v6 }
 0x2a8   :  { %v4630_v59 = vpop.f32.mrf.mxu0  ;;  %v3723_v60 = vpop.f32.mrf.mxu1 }
 0x2a9   :  { %v3547_v61 = vpack.c.bf16 %v3543_v55, %v3542_v54  ;;  %v849_v63 = vadd.f32 %v4630_v59, %v5438_v14  ;;  %v3760_v2 = vadd.f32 %v3753_v58, %v5171_v12  ;;  %v3751_v3 = vmul.f32 %v3723_v60, %v5164_v6  ;;  %4912 = vmatpush3.bf16.msra.mxu0 %v5038_v43 }
 0x2aa   :  { %v819_v9 = vpop.f32.mrf.mxu0  ;;  %v4907_v4 = vpop.f32.mrf.mxu1  ;;  %v3764_v11 = vmul.f32 0.2, %v3757_v57  ;;  %v3766_v14 = vmul.f32 0.2, %v3759_v62 }
 0x2ab   :  { %v847_v8 = vadd.f32 %v819_v9, %v594_v5  ;;  %v3756_v10 = vmul.f32 %v4907_v4, %v5164_v6  ;;  %4895 = vmatprep.mubr.msk.bf16.mxu0 %vm45_vm1, %v3547_v61  ;;  %v3767_v16 = vmul.f32 0.2, %v3760_v2  ;;  %v3758_v17 = vadd.f32 %v3751_v3, %v5171_v12 }
 0x2ac   :  { %v4633_v13 = vpop.f32.mrf.mxu0  ;;  %v3736_v15 = vpop.f32.mrf.mxu1  ;;  %4896 = vmatmul.mubr.msk.bf16.gmra.mxu0 %vm45_vm1, %v3548_v7  ;;  %v3771_v30 = vmax.f32 %v3757_v57, %v3764_v11  ;;  %v3773_v33 = vmax.f32 %v3759_v62, %v3766_v14 }
 0x2ad   :  { %v852_v18 = vadd.f32 %v4633_v13, %v5448_v20  ;;  %v3754_v19 = vmul.f32 %v3736_v15, %v5164_v6  ;;  %v3765_v21 = vmul.f32 0.2, %v3758_v17  ;;  %v3763_v22 = vadd.f32 %v3756_v10, %v5171_v12 }
 0x2ae   :  { %v832_v24 = vpop.f32.mrf.mxu0  ;;  %v4908_v25 = vpop.f32.mrf.mxu1  ;;  %v3774_v26 = vmax.f32 %v3760_v2, %v3767_v16  ;;  %v610_v20 = vadd.f32 %v609_v0, %v5459_v28 }
 0x2af   :  { %v3761_v27 = vadd.f32 %v3754_v19, %v5171_v12  ;;  %v850_v29 = vadd.f32 %v832_v24, %v5451_v23  ;;  %v3772_v44 = vmax.f32 %v3758_v17, %v3765_v21  ;;  %v3770_v36 = vmul.f32 0.2, %v3763_v22 }
 0x2b0   :  { %v4634_v31 = vpop.f32.mrf.mxu0  ;;  %v3739_v32 = vpop.f32.mrf.mxu1  ;;  %v3779_v38 = vpack.c.bf16 %v3774_v26, %v3773_v33 }
 0x2b1   :  { %v3755_v34 = vmul.f32 %v3739_v32, %v5164_v6  ;;  %v3778_v35 = vpack.c.bf16 %v3772_v44, %v3771_v30  ;;  %v3768_v39 = vmul.f32 0.2, %v3761_v27  ;;  %v3777_v45 = vmax.f32 %v3763_v22, %v3770_v36 }
 0x2b2   :  { %v835_v37 = vpop.f32.mrf.mxu0 }
 0x2b3   :  { %v3762_v40 = vadd.f32 %v3755_v34, %v5171_v12  ;;  %v851_v41 = vadd.f32 %v835_v37, %v610_v20  ;;  %4913 = vmatprep.mubr.msk.bf16.mxu0 %vm45_vm1, %v3778_v35  ;;  %v3775_v28 = vmax.f32 %v3761_v27, %v3768_v39  ;;  %v3781_v51 = vpack.c.bf16 %v3777_v45, %v3777_v45 }
 0x2b4   :  { %v4651_v42 = vpop.f32.mrf.mxu0  ;;  %4914 = vmatmul.mubr.msk.bf16.vlgmr.msra.gmra.mxu0 %vm45_vm1, %v3779_v38 }
 0x2b5   :  { %v3769_v23 = vmul.f32 0.2, %v3762_v40  ;;  %v1081_v43 = vadd.f32 %v4651_v42, %v848_v49 }
 0x2b6   :  { %v1049_v46 = vpop.f32.mrf.mxu0 }
 0x2b7   :  { %v3776_v0 = vmax.f32 %v3762_v40, %v3769_v23  ;;  %v1079_v6 = vadd.f32 %v1049_v46, %v846_v56 }
 0x2b8   :  { %v4652_v48 = vpop.f32.mrf.mxu0 }
 0x2b9   :  { %v3780_v47 = vpack.c.bf16 %v3776_v0, %v3775_v28  ;;  %v1082_v50 = vadd.f32 %v4652_v48, %v849_v63 }
 0x2ba   :  { %v1052_v52 = vpop.f32.mrf.mxu0 }
 0x2bb   :  { %4917 = vmatprep.mubr.msk.bf16.mxu0 %vm45_vm1, %v3780_v47  ;;  %v1080_v12 = vadd.f32 %v1052_v52, %v847_v8 }
 0x2bc   :  { %v4655_v53 = vpop.f32.mrf.mxu0  ;;  %4918 = vmatmul.mubr.msk.bf16.gmra.mxu0 %vm45_vm1, %v3781_v51 }
 0x2bd   :  { %v1085_v54 = vadd.f32 %v4655_v53, %v852_v18 }
 0x2be   :  { %v1065_v55 = vpop.f32.mrf.mxu0 }
 0x2bf   :  { %v1083_v57 = vadd.f32 %v1065_v55, %v850_v29 }
 0x2c0   :  { %v4656_v49 = vpop.f32.mrf.mxu0 }
 0x2c2   :  { %v1068_v58 = vpop.f32.mrf.mxu0 }
 0x2c3   :  { %v1084_v59 = vadd.f32 %v1068_v58, %v851_v41 }
 0x2c4   :  { %v4673_v60 = vpop.f32.mrf.mxu0 }
 0x2c5   :  { %v1314_v5 = vadd.f32 %v4673_v60, %v1081_v43 }
 0x2c6   :  { %v1282_v56 = vpop.f32.mrf.mxu0 }
 0x2c7   :  { %v1312_v61 = vadd.f32 %v1282_v56, %v1079_v6 }
 0x2c8   :  { %v4674_v62 = vpop.f32.mrf.mxu0 }
 0x2c9   :  { %v1315_v63 = vadd.f32 %v4674_v62, %v1082_v50 }
 0x2ca   :  { %v1285_v2 = vpop.f32.mrf.mxu0 }
 0x2cb   :  { %v1313_v3 = vadd.f32 %v1285_v2, %v1080_v12 }
 0x2cc   :  { %v4677_v9 = vpop.f32.mrf.mxu0 }
 0x2cd   :  { %v1318_v4 = vadd.f32 %v4677_v9, %v1085_v54 }
 0x2ce   :  { %v1298_v7 = vpop.f32.mrf.mxu0 }
 0x2cf   :  { %v1316_v8 = vadd.f32 %v1298_v7, %v1083_v57 }
 0x2d0   :  { %v4678_v10 = vpop.f32.mrf.mxu0 }
 0x2d2   :  { %v1301_v11 = vpop.f32.mrf.mxu0 }
 0x2d3   :  { %v1317_v16 = vadd.f32 %v1301_v11, %v1084_v59 }
 0x2d4   :  { %v4695_v17 = vpop.f32.mrf.mxu0 }
 0x2d5   :  { %v1547_v13 = vadd.f32 %v4695_v17, %v1314_v5 }
 0x2d6   :  { %v1515_v15 = vpop.f32.mrf.mxu0 }
 0x2d7   :  { %v1545_v14 = vadd.f32 %v1515_v15, %v1312_v61 }
 0x2d8   :  { %v4696_v18 = vpop.f32.mrf.mxu0 }
 0x2d9   :  { %v1548_v19 = vadd.f32 %v4696_v18, %v1315_v63 }
 0x2da   :  { %v1518_v21 = vpop.f32.mrf.mxu0 }
 0x2db   :  { %v1546_v22 = vadd.f32 %v1518_v21, %v1313_v3 }
 0x2dc   :  { %v4699_v24 = vpop.f32.mrf.mxu0 }
 0x2dd   :  { %v1551_v25 = vadd.f32 %v4699_v24, %v1318_v4 }
 0x2de   :  { %v1531_v26 = vpop.f32.mrf.mxu0 }
 0x2df   :  { %v1549_v27 = vadd.f32 %v1531_v26, %v1316_v8 }
 0x2e0   :  { %v4700_v29 = vpop.f32.mrf.mxu0 }
 0x2e2   :  { %v1534_v30 = vpop.f32.mrf.mxu0 }
 0x2e3   :  { %v1550_v44 = vadd.f32 %v1534_v30, %v1317_v16 }
 0x2e4   :  { %v4717_v31 = vpop.f32.mrf.mxu0 }
 0x2e5   :  { %v1780_v32 = vadd.f32 %v4717_v31, %v1547_v13 }
 0x2e6   :  { %v1748_v20 = vpop.f32.mrf.mxu0 }
 0x2e7   :  { %v1778_v33 = vadd.f32 %v1748_v20, %v1545_v14 }
 0x2e8   :  { %v4718_v34 = vpop.f32.mrf.mxu0 }
 0x2e9   :  { %v1781_v35 = vadd.f32 %v4718_v34, %v1548_v19 }
 0x2ea   :  { %v1751_v36 = vpop.f32.mrf.mxu0 }
 0x2eb   :  { %v1779_v37 = vadd.f32 %v1751_v36, %v1546_v22 }
 0x2ec   :  { %v4721_v38 = vpop.f32.mrf.mxu0 }
 0x2ed   :  { %v1784_v39 = vadd.f32 %v4721_v38, %v1551_v25 }
 0x2ee   :  { %v1764_v40 = vpop.f32.mrf.mxu0 }
 0x2ef   :  { %v1782_v41 = vadd.f32 %v1764_v40, %v1549_v27 }
 0x2f0   :  { %v4722_v23 = vpop.f32.mrf.mxu0 }
 0x2f2   :  { %v1767_v42 = vpop.f32.mrf.mxu0 }
 0x2f3   :  { %v1783_v43 = vadd.f32 %v1767_v42, %v1550_v44 }
 0x2f4   :  { %v4739_v45 = vpop.f32.mrf.mxu0 }
 0x2f5   :  { %v2013_v28 = vadd.f32 %v4739_v45, %v1780_v32 }
 0x2f6   :  { %v1981_v0 = vpop.f32.mrf.mxu0 }
 0x2f7   :  { %v2011_v46 = vadd.f32 %v1981_v0, %v1778_v33 }
 0x2f8   :  { %v4740_v6 = vpop.f32.mrf.mxu0 }
 0x2f9   :  { %v2014_v47 = vadd.f32 %v4740_v6, %v1781_v35 }
 0x2fa   :  { %v1984_v48 = vpop.f32.mrf.mxu0 }
 0x2fb   :  { %v2012_v50 = vadd.f32 %v1984_v48, %v1779_v37 }
 0x2fc   :  { %v4743_v51 = vpop.f32.mrf.mxu0 }
 0x2fd   :  { %v2017_v52 = vadd.f32 %v4743_v51, %v1784_v39 }
 0x2fe   :  { %v1997_v12 = vpop.f32.mrf.mxu0 }
 0x2ff   :  { %v2015_v53 = vadd.f32 %v1997_v12, %v1782_v41 }
 0x300   :  { %v4744_v54 = vpop.f32.mrf.mxu0 }
 0x302   :  { %v2000_v55 = vpop.f32.mrf.mxu0 }
 0x303   :  { %v2016_v57 = vadd.f32 %v2000_v55, %v1783_v43 }
 0x304   :  { %v4761_v49 = vpop.f32.mrf.mxu0 }
 0x305   :  { %v2246_v58 = vadd.f32 %v4761_v49, %v2013_v28  ;;  %v5045_v28 = vmov 0.0  }
 0x306   :  { %v2214_v59 = vpop.f32.mrf.mxu0  ;;  %4921 = vmatprep.subr.mxu1 %v5045_v28  ;;  %4935 = vmatprep.mubr.msk.f32.mxu1 %vm5046_vm2, %v5045_v28 }
 0x307   :  { %v2244_v60 = vadd.f32 %v2214_v59, %v2011_v46 }
 0x308   :  { %v4762_v5 = vpop.f32.mrf.mxu0 }
 0x309   :  { %v2247_v56 = vadd.f32 %v4762_v5, %v2014_v47 }
 0x30a   :  { %v2217_v61 = vpop.f32.mrf.mxu0 }
 0x30b   :  { %v2245_v62 = vadd.f32 %v2217_v61, %v2012_v50 }
 0x30c   :  { %v4765_v63 = vpop.f32.mrf.mxu0 }
 0x30d   :  { %v2250_v2 = vadd.f32 %v4765_v63, %v2017_v52 }
 0x30e   :  { %v2230_v3 = vpop.f32.mrf.mxu0 }
 0x30f   :  { %v2248_v9 = vadd.f32 %v2230_v3, %v2015_v53 }
 0x310   :  { %v4766_v4 = vpop.f32.mrf.mxu0 }
 0x312   :  { %v2233_v7 = vpop.f32.mrf.mxu0 }
 0x313   :  { %v2249_v8 = vadd.f32 %v2233_v7, %v2016_v57 }
 0x314   :  { %v4783_v10 = vpop.f32.mrf.mxu0 }
 0x315   :  { %v2479_v11 = vadd.f32 %v4783_v10, %v2246_v58 }
 0x316   :  { %v2447_v16 = vpop.f32.mrf.mxu0 }
 0x317   :  { %v2477_v17 = vadd.f32 %v2447_v16, %v2244_v60 }
 0x318   :  { %v4784_v13 = vpop.f32.mrf.mxu0 }
 0x319   :  { %v2480_v15 = vadd.f32 %v4784_v13, %v2247_v56 }
 0x31a   :  { %v2450_v14 = vpop.f32.mrf.mxu0 }
 0x31b   :  { %v2478_v18 = vadd.f32 %v2450_v14, %v2245_v62 }
 0x31c   :  { %v4787_v19 = vpop.f32.mrf.mxu0 }
 0x31d   :  { %v2483_v21 = vadd.f32 %v4787_v19, %v2250_v2 }
 0x31e   :  { %v2463_v22 = vpop.f32.mrf.mxu0 }
 0x31f   :  { %v2481_v24 = vadd.f32 %v2463_v22, %v2248_v9 }
 0x320   :  { %v4788_v25 = vpop.f32.mrf.mxu0 }
 0x322   :  { %v2466_v26 = vpop.f32.mrf.mxu0 }
 0x323   :  { %v2482_v27 = vadd.f32 %v2466_v26, %v2249_v8 }
 0x324   :  { %v4805_v29 = vpop.f32.mrf.mxu0 }
 0x325   :  { %v2712_v30 = vadd.f32 %v4805_v29, %v2479_v11 }
 0x326   :  { %v2680_v44 = vpop.f32.mrf.mxu0 }
 0x327   :  { %v2710_v31 = vadd.f32 %v2680_v44, %v2477_v17 }
 0x328   :  { %v4806_v32 = vpop.f32.mrf.mxu0 }
 0x329   :  { %v2713_v20 = vadd.f32 %v4806_v32, %v2480_v15 }
 0x32a   :  { %v2683_v33 = vpop.f32.mrf.mxu0 }
 0x32b   :  { %v2711_v34 = vadd.f32 %v2683_v33, %v2478_v18 }
 0x32c   :  { %v4809_v35 = vpop.f32.mrf.mxu0 }
 0x32d   :  { %v2716_v36 = vadd.f32 %v4809_v35, %v2483_v21 }
 0x32e   :  { %v2696_v37 = vpop.f32.mrf.mxu0 }
 0x32f   :  { %v2714_v38 = vadd.f32 %v2696_v37, %v2481_v24 }
 0x330   :  { %v4810_v39 = vpop.f32.mrf.mxu0 }
 0x332   :  { %v2699_v40 = vpop.f32.mrf.mxu0 }
 0x333   :  { %v2715_v41 = vadd.f32 %v2699_v40, %v2482_v27 }
 0x334   :  { %v4827_v23 = vpop.f32.mrf.mxu0 }
 0x335   :  { %v2945_v42 = vadd.f32 %v4827_v23, %v2712_v30 }
 0x336   :  { %v2913_v43 = vpop.f32.mrf.mxu0 }
 0x337   :  { %v2943_v10 = vadd.f32 %v2913_v43, %v2710_v31 }
 0x338   :  { %v4828_v45 = vpop.f32.mrf.mxu0 }
 0x339   :  { %v2946_v13 = vadd.f32 %v4828_v45, %v2713_v20 }
 0x33a   :  { %v2916_v0 = vpop.f32.mrf.mxu0 }
 0x33b   :  { %v2944_v15 = vadd.f32 %v2916_v0, %v2711_v34 }
 0x33c   :  { %v4831_v46 = vpop.f32.mrf.mxu0 }
 0x33d   :  { %v2949_v6 = vadd.f32 %v4831_v46, %v2716_v36 }
 0x33e   :  { %v2929_v47 = vpop.f32.mrf.mxu0 }
 0x33f   :  { %v2947_v26 = vadd.f32 %v2929_v47, %v2714_v38 }
 0x340   :  { %v4832_v48 = vpop.f32.mrf.mxu0 }
 0x342   :  { %v2932_v50 = vpop.f32.mrf.mxu0 }
 0x343   :  { %v2948_v34 = vadd.f32 %v2932_v50, %v2715_v41 }
 0x344   :  { %v4849_v51 = vpop.f32.mrf.mxu0 }
 0x345   :  { %v3178_v14 = vadd.f32 %v4849_v51, %v2945_v42 }
 0x346   :  { %v3146_v52 = vpop.f32.mrf.mxu0 }
 0x347   :  { %v3176_v16 = vadd.f32 %v3146_v52, %v2943_v10 }
 0x348   :  { %v4850_v12 = vpop.f32.mrf.mxu0 }
 0x349   :  { %v3179_v21 = vadd.f32 %v4850_v12, %v2946_v13 }
 0x34a   :  { %v3149_v53 = vpop.f32.mrf.mxu0 }
 0x34b   :  { %v3177_v22 = vadd.f32 %v3149_v53, %v2944_v15 }
 0x34c   :  { %v4853_v54 = vpop.f32.mrf.mxu0 }
 0x34d   :  { %v3182_v37 = vadd.f32 %v4853_v54, %v2949_v6 }
 0x34e   :  { %v3162_v55 = vpop.f32.mrf.mxu0 }
 0x34f   :  { %v3180_v31 = vadd.f32 %v3162_v55, %v2947_v26 }
 0x350   :  { %v4854_v57 = vpop.f32.mrf.mxu0 }
 0x352   :  { %v3165_v49 = vpop.f32.mrf.mxu0 }
 0x353   :  { %v3181_v43 = vadd.f32 %v3165_v49, %v2948_v34 }
 0x354   :  { %v4871_v58 = vpop.f32.mrf.mxu0 }
 0x355   :  { %v3411_v24 = vadd.f32 %v4871_v58, %v3178_v14 }
 0x356   :  { %v3379_v59 = vpop.f32.mrf.mxu0 }
 0x357   :  { %v3409_v18 = vadd.f32 %v3379_v59, %v3176_v16 }
 0x358   :  { %v4872_v60 = vpop.f32.mrf.mxu0 }
 0x359   :  { %v3412_v29 = vadd.f32 %v4872_v60, %v3179_v21 }
 0x35a   :  { %v3382_v5 = vpop.f32.mrf.mxu0 }
 0x35b   :  { %v3410_v30 = vadd.f32 %v3382_v5, %v3177_v22 }
 0x35c   :  { %v4875_v56 = vpop.f32.mrf.mxu0 }
 0x35d   :  { %v3415_v45 = vadd.f32 %v4875_v56, %v3182_v37 }
 0x35e   :  { %v3395_v61 = vpop.f32.mrf.mxu0 }
 0x35f   :  { %v3413_v39 = vadd.f32 %v3395_v61, %v3180_v31 }
 0x360   :  { %v4876_v62 = vpop.f32.mrf.mxu0 }
 0x362   :  { %v3398_v63 = vpop.f32.mrf.mxu0 }
 0x363   :  { %v3414_v50 = vadd.f32 %v3398_v63, %v3181_v43 }
 0x364   :  { %v4893_v2 = vpop.f32.mrf.mxu0 }
 0x365   :  { %v3644_v44 = vadd.f32 %v4893_v2, %v3411_v24 }
 0x366   :  { %v3612_v3 = vpop.f32.mrf.mxu0 }
 0x367   :  { %v3642_v25 = vadd.f32 %v3612_v3, %v3409_v18 }
 0x368   :  { %v4894_v9 = vpop.f32.mrf.mxu0 }
 0x369   :  { %v3645_v35 = vadd.f32 %v4894_v9, %v3412_v29 }
 0x36a   :  { %v3615_v4 = vpop.f32.mrf.mxu0 }
 0x36b   :  { %v3643_v36 = vadd.f32 %v3615_v4, %v3410_v30 }
 0x36c   :  { %v4897_v7 = vpop.f32.mrf.mxu0 }
 0x36d   :  { %v3648_v51 = vadd.f32 %v4897_v7, %v3415_v45 }
 0x36e   :  { %v3628_v8 = vpop.f32.mrf.mxu0 }
 0x36f   :  { %v3646_v0 = vadd.f32 %v3628_v8, %v3413_v39 }
 0x370   :  { %v4898_v11 = vpop.f32.mrf.mxu0 }
 0x372   :  { %v3631_v17 = vpop.f32.mrf.mxu0 }
 0x373   :  { %v3647_v58 = vadd.f32 %v3631_v17, %v3414_v50 }
 0x374   :  { %v4915_v19 = vpop.f32.mrf.mxu0 }
 0x375   :  { %v5824_v20 = vadd.f32 %v4915_v19, %v3644_v44 }
 0x376   :  { %v3845_v27 = vpop.f32.mrf.mxu0 }
 0x377   :  { %v5822_v32 = vadd.f32 %v3845_v27, %v3642_v25  ;;  %v3906_v47 = vmul.f32 %v5824_v20, %v5824_v20  ;;  %v3886_v52 = vsel %vm3882_vm3, %v5824_v20, 0.0 }
 0x378   :  { %v4916_v33 = vpop.f32.mrf.mxu0 }
 0x379   :  { %v3904_v38 = vmul.f32 %v5822_v32, %v5822_v32  ;;  %v5828_v23 = vadd.f32 %v4916_v33, %v3645_v35  ;;  %v3883_v41 = vsel %vm3882_vm3, %v5822_v32, 0.0  ;;  %v3914_v56 = vsel %vm3882_vm3, %v3906_v47, 0.0  ;;  %v3935_v47 = vld [vmem:[%s5909_s4 + $0x2] sm:$0x1] }
 0x37a   :  { %v3848_v40 = vpop.f32.mrf.mxu0 }
 0x37b   :  { %v5830_v42 = vadd.f32 %v3848_v40, %v3643_v36  ;;  %v3911_v54 = vsel %vm3882_vm3, %v3904_v38, 0.0  ;;  %v3907_v55 = vmul.f32 %v5828_v23, %v5828_v23  ;;  %v3888_v61 = vsel %vm3882_vm3, %v5828_v23, 0.0 }
 0x37c   :  { %v4919_v46 = vpop.f32.mrf.mxu0 }
 0x37d   :  { %v3884_v6 = vsel %vm3882_vm3, %v5830_v42, 0.0  ;;  %v3905_v48 = vmul.f32 %v5830_v42, %v5830_v42  ;;  %v3881_v62 = vadd.f32 %v4919_v46, %v3648_v51  ;;  %v3916_v4 = vsel %vm3882_vm3, %v3907_v55, 0.0 }
 0x37e   :  { %v3885_v12 = vadd.f32 %v3884_v6, %v3883_v41  ;;  %v3861_v53 = vpop.f32.mrf.mxu0 }
 0x37f   :  { %v3912_v57 = vsel %vm3882_vm3, %v3905_v48, 0.0  ;;  %v3879_v49 = vadd.f32 %v3861_v53, %v3646_v0  ;;  %v3910_v16 = vmul.f32 %v3881_v62, %v3881_v62  ;;  %v3895_v19 = vsel %vm3894_vm4, %v3881_v62, 0.0  ;;  %v3937_v48 = vld [vmem:[%s5909_s4 + $0x3] sm:$0x1] }
 0x380   :  { %v3887_v59 = vadd.f32 %v3886_v52, %v3885_v12  ;;  %v3913_v60 = vadd.f32 %v3912_v57, %v3911_v54  ;;  %v4920_v5 = vpop.f32.mrf.mxu0 }
 0x381   :  { %v3908_v63 = vmul.f32 %v3879_v49, %v3879_v49  ;;  %v3890_v7 = vsel %vm3882_vm3, %v3879_v49, 0.0  ;;  %v3922_v25 = vsel %vm3894_vm4, %v3910_v16, 0.0 }
 0x382   :  { %v3915_v2 = vadd.f32 %v3914_v56, %v3913_v60  ;;  %v3889_v3 = vadd.f32 %v3888_v61, %v3887_v59  ;;  %v3864_v9 = vpop.f32.mrf.mxu0 }
 0x383   :  { %v3880_v8 = vadd.f32 %v3864_v9, %v3647_v58  ;;  %v3918_v17 = vsel %vm3882_vm3, %v3908_v63, 0.0 }
 0x384   :  { %v3891_v10 = vadd.f32 %v3890_v7, %v3889_v3  ;;  %v3917_v11 = vadd.f32 %v3916_v4, %v3915_v2 }
 0x385   :  { %v3892_v13 = vsel %vm3882_vm3, %v3880_v8, 0.0  ;;  %v3909_v15 = vmul.f32 %v3880_v8, %v3880_v8 }
 0x386   :  { %v3919_v14 = vadd.f32 %v3918_v17, %v3917_v11  ;;  %v3893_v18 = vadd.f32 %v3892_v13, %v3891_v10  ;;  %v3981_v11 = vld [vmem:[%s5910_s5 + $0x20] sm:$0xff] }
 0x387   :  { %v3920_v21 = vsel %vm3882_vm3, %v3909_v15, 0.0  ;;  %v3980_v15 = vld [vmem:[%s5910_s5 + $0x18] sm:$0xff] }
 0x388   :  { %v3896_v22 = vadd.f32 %v3895_v19, %v3893_v18  ;;  %v3921_v24 = vadd.f32 %v3920_v21, %v3919_v14  ;;  %v3979_v21 = vld [vmem:[%s5910_s5 + $0x10] sm:$0xff] }
 0x38a   :  { %v3897_v26 = vrot.slane %v3896_v22, 4  ;;  %v3923_v27 = vadd.f32 %v3922_v25, %v3921_v24  ;;  %v3978_v25 = vld [vmem:[%s5910_s5 + $0x8] sm:$0xff] }
 0x38c   :  { %v3898_v29 = vadd.f32 %v3897_v26, %v3896_v22  ;;  %v3924_v30 = vrot.slane %v3923_v27, 4 }
 0x38e   :  { %v3899_v44 = vrot.slane %v3898_v29, 2  ;;  %v3925_v31 = vadd.f32 %v3924_v30, %v3923_v27 }
 0x390   :  { %v3900_v33 = vadd.f32 %v3899_v44, %v3898_v29  ;;  %v3926_v35 = vrot.slane %v3925_v31, 2  ;;  %v3977_v29 = vld [vmem:[%s5910_s5] sm:$0xff] }
 0x392   :  { %v3901_v36 = vrot.slane %v3900_v33, 1  ;;  %v3927_v34 = vadd.f32 %v3926_v35, %v3925_v31  ;;  %v3976_v31 = vld [vmem:[%s5911_s6] sm:$0x3] }
 0x394   :  { %v3902_v37 = vadd.f32 %v3901_v36, %v3900_v33  ;;  %v3928_v39 = vrot.slane %v3927_v34, 1 }
 0x396   :  { %v3903_v40 = vmul.f32 0.02, %v3902_v37  ;;  %v3929_v38 = vadd.f32 %v3928_v39, %v3927_v34  ;;  %v4373_v34 = vld [vmem:[%s5909_s4 + $0x4] ss:$0 sm:$0xff] }
 0x398   :  { %v3930_v43 = vmul.f32 0.02, %v3929_v38  ;;  %v3931_v45 = vmul.f32 %v3903_v40, %v3903_v40 }
 0x39a   :  { %v3932_v0 = vsub.f32 %v3930_v43, %v3931_v45 }
 0x39c   :  { %v3933_v46 = vadd.f32 1e-05, %v3932_v0 }
 0x39e   :  { %5042 = vrsqrt.f32 %v3933_v46 }
 0x3ab   :  { %v5043_v41 = vpop.eup %5042 }
 0x3ac   :  { %v3936_v6 = vmul.f32 %v5043_v41, %v3935_v47 }
 0x3ae   :  { %v3938_v50 = vmul.f32 %v3936_v6, %v3903_v40  ;;  %v3943_v51 = vrot.slane %v3936_v6, %v5158_v1 }
 0x3b0   :  { %v3939_v52 = vsub.f32 %v3937_v48, %v3938_v50  ;;  %v3949_v12 = vmul.f32 %v3943_v51, %v3880_v8  ;;  %v3950_v53 = vmul.f32 %v3943_v51, %v3881_v62  ;;  %v3948_v54 = vmul.f32 %v3943_v51, %v3879_v49 }
 0x3b1   :  { %v3947_v55 = vmul.f32 %v3943_v51, %v5828_v23  ;;  %v3946_v57 = vmul.f32 %v3943_v51, %v5824_v20  ;;  %v3945_v58 = vmul.f32 %v3943_v51, %v5830_v42  ;;  %v3944_v59 = vmul.f32 %v3943_v51, %v5822_v32  ;;  %v3983_v20 = vld [vmem:[%s5910_s5 + $0x30] sm:$0x3] }
 0x3b2   :  { %v3954_v60 = vrot.slane %v3939_v52, %v5158_v1  ;;  %v3982_v1 = vld [vmem:[%s5910_s5 + $0x28] sm:$0xff] }
 0x3b4   :  { %v3960_v5 = vadd.f32 %v3954_v60, %v3949_v12  ;;  %v3961_v56 = vadd.f32 %v3954_v60, %v3950_v53  ;;  %v3959_v61 = vadd.f32 %v3954_v60, %v3948_v54  ;;  %v3958_v63 = vadd.f32 %v3954_v60, %v3947_v55 }
 0x3b5   :  { %v3957_v2 = vadd.f32 %v3954_v60, %v3946_v57  ;;  %v3956_v3 = vadd.f32 %v3954_v60, %v3945_v58  ;;  %v3955_v9 = vadd.f32 %v3954_v60, %v3944_v59 }
 0x3b6   :  { %v3967_v4 = vmul.f32 0.2, %v3960_v5  ;;  %v3968_v62 = vmul.f32 0.2, %v3961_v56  ;;  %v3966_v49 = vmul.f32 0.2, %v3959_v61 }
 0x3b7   :  { %v3965_v7 = vmul.f32 0.2, %v3958_v63  ;;  %v3964_v10 = vmul.f32 0.2, %v3957_v2  ;;  %v3963_v13 = vmul.f32 0.2, %v3956_v3 }
 0x3b8   :  { %v3974_v23 = vmax.f32 %v3960_v5, %v3967_v4  ;;  %v3975_v42 = vmax.f32 %v3961_v56, %v3968_v62  ;;  %v3973_v8 = vmax.f32 %v3959_v61, %v3966_v49  ;;  %v3962_v19 = vmul.f32 0.2, %v3955_v9 }
 0x3b9   :  { %v3972_v17 = vmax.f32 %v3958_v63, %v3965_v7  ;;  %v3971_v18 = vmax.f32 %v3957_v2, %v3964_v10  ;;  %v3970_v24 = vmax.f32 %v3956_v3, %v3963_v13 }
 0x3ba   :  { %v3990_v32 = vmul.f32 %v3983_v20, %v3975_v42  ;;  %v3989_v16 = vmul.f32 %v3982_v1, %v3974_v23  ;;  %v3988_v14 = vmul.f32 %v3981_v11, %v3973_v8  ;;  %v3969_v27 = vmax.f32 %v3955_v9, %v3962_v19 }
 0x3bb   :  { %v3987_v22 = vmul.f32 %v3980_v15, %v3972_v17  ;;  %v3986_v26 = vmul.f32 %v3979_v21, %v3971_v18  ;;  %v3985_v30 = vmul.f32 %v3978_v25, %v3970_v24 }
 0x3bc   :  { %4922 = vmatpush3.msk.msra.mxu1 %vm3995_vm5, %v3990_v32  ;;  %v3984_v44 = vmul.f32 %v3977_v29, %v3969_v27 }
 0x3bd   :  { %4923 = vmatprep.subr.mxu1 %v5045_v28 }
 0x3be   :  { %4924 = vmatpush3.msra.mxu1 %v3989_v16 }
 0x3bf   :  { %4925 = vmatprep.subr.mxu1 %v5045_v28 }
 0x3c0   :  { %4926 = vmatpush3.msra.mxu1 %v3988_v14 }
 0x3c1   :  { %4927 = vmatprep.subr.mxu1 %v5045_v28 }
 0x3c2   :  { %4928 = vmatpush3.msra.mxu1 %v3987_v22 }
 0x3c3   :  { %4929 = vmatprep.subr.mxu1 %v5045_v28 }
 0x3c4   :  { %4930 = vmatpush3.msra.mxu1 %v3986_v26 }
 0x3c5   :  { %4931 = vmatprep.subr.mxu1 %v5045_v28 }
 0x3c6   :  { %4932 = vmatpush3.msra.mxu1 %v3985_v30 }
 0x3c7   :  { %4933 = vmatprep.subr.mxu1 %v5045_v28 }
 0x3c8   :  { %4934 = vmatpush3.msra.mxu1 %v3984_v44 }
 0x3c9   :  { %4936 = vmatmul.mubr.msk.f32.vlgmr.msra.gmra.mxu1 %vm3991_vm6, %v3976_v31 }
 0x489   :  { %v4065_v33 = vpop.f32.mrf.mxu1 }
 0x48a   :  { %v4069_v35 = vsel %vm3894_vm4, %v4065_v33, 0.0 }
 0x48b   :  { %v4937_v36 = vpop.f32.mrf.mxu1  ;;  %4070 = vadd.xlane.f32.xlu1 %v4069_v35 }
 0x514   :  { %v4071_v37 = vpop.xlane.xlu1 %4070 }
 0x515   :  { %v4077_v39 = vadd.f32 %v4373_v34, %v4071_v37 }
 0x517   :  { %4079 = vst.msk [vmem:[%s5912_s7] sm:$0x3] %vm4078_vm7, %v4077_v39 }

</bundles_post_ra>
